<compile_context>
chip_gen: v7x
topology: tpu7x:2x2x1
jax: 0.10.0
libtpu: 0.0.40
codegen_flags: <defaults>
</compile_context>

<pallas_src>
import functools

import jax
import jax.numpy as jnp
from jax.experimental import pallas as pl
from jax.experimental.pallas import tpu as pltpu

# ---------------------------------------------------------------------------
# Scaled-down dims (full model: OUT_DIM=2048, CURR_DIM=512, CONV_DIM=256,
# SHP=128).  Semantics are identical; only sizes are reduced.
# ---------------------------------------------------------------------------
BATCH = 2
OUT_DIM = 64      # channels of the backbone feature ('ft' output)
CURR_DIM = 32
CONV_DIM = 16
NCLS = 5
H_IN = W_IN = 8   # spatial size of the backbone feature
SHP = 16          # UpsamplingBilinear2d target size

# 32 MiB compiles on every generation (v5e default scoped VMEM is only 16 MiB).
# Raise toward 64-128 MiB on v5e/v6e for larger TH/tm tiles at full dims; keep
# well under 64 MiB physical on v7x.
VMEM_LIMIT_BYTES = 32 * 1024 * 1024


def _pick_tile(n, candidates):
    """Largest candidate tile that divides n, else the full (untiled) dim.
    NOTE: at odd full-model shapes the fallback can produce one huge block —
    guard / pad-to-tile before using this at full scale."""
    for c in candidates:
        if n % c == 0:
            return c
    return n


def _pick_th(h):
    """Output rows per conv3x3 grid step (cap ~8-16 on v7x at full dims)."""
    for c in (32, 16, 8):
        if h % c == 0:
            return c
    return h


# ---------------------------------------------------------------------------
# Direct 3x3 conv (stride 1, pad 1), fused bias/BN-shift (+optional add) + ReLU.
# Grid = (N, H/TH, Cout/TN); the whole 3x3 reduction happens in the body.
# ---------------------------------------------------------------------------
def _conv3x3_kernel(x_ref, top_ref, bot_ref, w_ref, t_ref, *rest,
                    th, w_out, cin, relu, has_add):
    if has_add:
        a_ref, o_ref, slab_ref = rest
    else:
        (o_ref, slab_ref), a_ref = rest, None

    hb = pl.program_id(1)
    last_hb = pl.num_programs(1) - 1
    cout = w_ref.shape[-1]

    # --- assemble zero-padded (th+2, w+2, cin) halo slab in VMEM -----------
    # (At full dims, zero only the halo columns/rows instead of the full slab.)
    slab_ref[...] = jnp.zeros_like(slab_ref)
    slab_ref[1:th + 1, 1:w_out + 1, :] = x_ref[0]

    @pl.when(hb > 0)
    def _top():
        slab_ref[0:1, 1:w_out + 1, :] = top_ref[0]

    @pl.when(hb < last_hb)
    def _bot():
        slab_ref[th + 1:th + 2, 1:w_out + 1, :] = bot_ref[0]

    # --- full 3x3 reduction: one (th*w, cin)x(cin, cout) matmul per tap ----
    acc = jnp.zeros((th * w_out, cout), jnp.float32)
    for dh in range(3):
        for dw in range(3):
            xs = slab_ref[dh:dh + th, dw:dw + w_out, :].reshape(th * w_out, cin)
            acc = acc + jnp.dot(xs, w_ref[dh * 3 + dw],
                                preferred_element_type=jnp.float32)

    # --- epilogue: +shift (+add) (+ReLU); BN scale already folded into w ---
    r = acc + t_ref[...]
    if has_add:
        r = r + a_ref[...].reshape(th * w_out, cout).astype(jnp.float32)
    if relu:
        r = jnp.maximum(r, 0.0)
    o_ref[...] = r.reshape(1, th, w_out, cout).astype(o_ref.dtype)


def conv3x3(x, w, scale, shift, relu=False, add=None, out_dtype=jnp.bfloat16):
    """x: (N,H,W,Cin) bf16, w: (3,3,Cin,Cout) f32, scale/shift: (Cout,) f32,
    add: (N,H,W,Cout).  `scale` (BN) is folded into w at trace time."""
    N, H, W, C = x.shape
    Cout = w.shape[-1]
    TH = _pick_th(H)
    # Cout tiling keeps the resident weight block small at full dims (v7x).
    TN = Cout if Cout <= 256 else _pick_tile(Cout, (256, 128))
    if scale is not None:
        w = w * scale                                      # fold BN scale
    wr = w.reshape(9, C, Cout).astype(jnp.bfloat16)
    t2 = shift.reshape(1, Cout).astype(jnp.float32)

    in_specs = [
        # main (non-overlapping) row block
        pl.BlockSpec((1, TH, W, C), lambda n, hb, j: (n, hb, 0, 0)),
        # one-row halos above/below (block size 1 => block index == row index)
        pl.BlockSpec((1, 1, W, C),
                     lambda n, hb, j: (n, jnp.maximum(hb * TH - 1, 0), 0, 0)),
        pl.BlockSpec((1, 1, W, C),
                     lambda n, hb, j: (n, jnp.minimum(hb * TH + TH, H - 1), 0, 0)),
        # weights: constant over (n, hb); only the Cout slice varies
        pl.BlockSpec((9, C, TN), lambda n, hb, j: (0, 0, j)),
        pl.BlockSpec((1, TN), lambda n, hb, j: (0, j)),
    ]
    args = [x, x, x, wr, t2]
    if add is not None:
        in_specs.append(pl.BlockSpec((1, TH, W, TN),
                                     lambda n, hb, j: (n, hb, 0, j)))
        args.append(add)

    kernel = functools.partial(_conv3x3_kernel, th=TH, w_out=W, cin=C,
                               relu=relu, has_add=add is not None)
    return pl.pallas_call(
        kernel,
        out_shape=jax.ShapeDtypeStruct((N, H, W, Cout), out_dtype),
        grid_spec=pltpu.PrefetchScalarGridSpec(
            num_scalar_prefetch=0,
            grid=(N, H // TH, Cout // TN),
            in_specs=in_specs,
            out_specs=pl.BlockSpec((1, TH, W, TN),
                                   lambda n, hb, j: (n, hb, 0, j)),
            scratch_shapes=[pltpu.VMEM((TH + 2, W + 2, C), jnp.bfloat16)],
        ),
        compiler_params=pltpu.CompilerParams(
            dimension_semantics=("parallel", "parallel", "parallel"),
            vmem_limit_bytes=VMEM_LIMIT_BYTES),
    )(*args)


# ---------------------------------------------------------------------------
# 1x1 conv as a fused matmul:  O = act(A @ (w*scale) + shift)
# ---------------------------------------------------------------------------
def _mm_bias_kernel(a_ref, b_ref, t_ref, o_ref, *, relu):
    r = jnp.dot(a_ref[...], b_ref[...], preferred_element_type=jnp.float32)
    r = r + t_ref[...]
    if relu:
        r = jnp.maximum(r, 0.0)
    o_ref[...] = r.astype(o_ref.dtype)


def conv1x1(x, w, scale, shift, relu=False, out_dtype=jnp.bfloat16):
    """x: (N,H,W,Cin), w: (Cin,Cout).  `scale` folded into w at trace time."""
    N, H, W, C = x.shape
    Cout = w.shape[-1]
    if scale is not None:
        w = w * scale
    M = N * H * W
    # Large tm amortizes per-step overhead (raise further on v5e/v6e at full dims).
    tm = _pick_tile(M, (1024, 512, 256, 128))
    tn = _pick_tile(Cout, (512, 256, 128))
    out = pl.pallas_call(
        functools.partial(_mm_bias_kernel, relu=relu),
        out_shape=jax.ShapeDtypeStruct((M, Cout), out_dtype),
        grid_spec=pltpu.PrefetchScalarGridSpec(
            num_scalar_prefetch=0,
            grid=(M // tm, Cout // tn),
            in_specs=[
                pl.BlockSpec((tm, C), lambda i, j: (i, 0)),
                pl.BlockSpec((C, tn), lambda i, j: (0, j)),
                pl.BlockSpec((1, tn), lambda i, j: (0, j)),
            ],
            out_specs=pl.BlockSpec((tm, tn), lambda i, j: (i, j)),
        ),
        compiler_params=pltpu.CompilerParams(
            dimension_semantics=("parallel", "parallel"),
            vmem_limit_bytes=VMEM_LIMIT_BYTES),
    )(x.reshape(M, C), w.astype(jnp.bfloat16),
      shift.reshape(1, Cout).astype(jnp.float32))
    return out.reshape(N, H, W, Cout)


# ---------------------------------------------------------------------------
# UpsamplingBilinear2d (align_corners=True): separable, two small matmuls.
# Interpolation matrices stay f32; only free (metadata) reshapes in between.
# ---------------------------------------------------------------------------
def _up_h_kernel(m_ref, x_ref, o_ref):
    o_ref[0] = jnp.dot(m_ref[...], x_ref[0].astype(jnp.float32),
                       preferred_element_type=jnp.float32).astype(o_ref.dtype)


def _up_w_kernel(m_ref, x_ref, o_ref, *, tb):
    m = m_ref[...]
    for b in range(tb):      # unrolled: amortizes the ~600-cycle step cost
        o_ref[b] = jnp.dot(m, x_ref[b].astype(jnp.float32),
                           preferred_element_type=jnp.float32).astype(o_ref.dtype)


def _interp_matrix(n_in, n_out):
    """align_corners=True bilinear interpolation matrix (n_out, n_in), f32."""
    if n_in == 1 or n_out == 1:
        src = jnp.zeros((n_out,), jnp.float32)
    else:
        src = jnp.arange(n_out, dtype=jnp.float32) * (n_in - 1) / (n_out - 1)
    lo = jnp.clip(jnp.floor(src).astype(jnp.int32), 0, n_in - 1)
    hi = jnp.clip(lo + 1, 0, n_in - 1)
    w_hi = src - lo.astype(jnp.float32)
    w_lo = 1.0 - w_hi
    idx = jnp.arange(n_out)
    A = jnp.zeros((n_out, n_in), jnp.float32)
    A = A.at[idx, lo].add(w_lo).at[idx, hi].add(w_hi)
    return A


def upsample_bilinear(x, out_h, out_w):
    """x: (N,H,W,C) -> (N,out_h,out_w,C)."""
    N, H, W, C = x.shape
    Ah = _interp_matrix(H, out_h)        # f32 — exact align_corners weights
    Aw = _interp_matrix(W, out_w)

    # Stage 1: contract H.  View x as (N, H, W*C) (free reshape).
    WC = W * C
    tc = _pick_tile(WC, (512, 256, 128))
    t = pl.pallas_call(
        _up_h_kernel,
        out_shape=jax.ShapeDtypeStruct((N, out_h, WC), x.dtype),
        grid_spec=pltpu.PrefetchScalarGridSpec(
            num_scalar_prefetch=0,
            grid=(N, WC // tc),
            in_specs=[
                pl.BlockSpec((out_h, H), lambda n, j: (0, 0)),
                pl.BlockSpec((1, H, tc), lambda n, j: (n, 0, j)),
            ],
            out_specs=pl.BlockSpec((1, out_h, tc), lambda n, j: (n, 0, j)),
        ),
        compiler_params=pltpu.CompilerParams(
            dimension_semantics=("parallel", "parallel"),
            vmem_limit_bytes=VMEM_LIMIT_BYTES),
    )(Ah, x.reshape(N, H, WC))

    # Stage 2: contract W.  View t as (N*out_h, W, C); TB rows per grid step.
    MB = N * out_h
    TB = _pick_tile(MB, (16, 8, 4, 2))
    t = t.reshape(MB, W, C)
    out = pl.pallas_call(
        functools.partial(_up_w_kernel, tb=TB),
        out_shape=jax.ShapeDtypeStruct((MB, out_w, C), x.dtype),
        grid_spec=pltpu.PrefetchScalarGridSpec(
            num_scalar_prefetch=0,
            grid=(MB // TB,),
            in_specs=[
                pl.BlockSpec((out_w, W), lambda m: (0, 0)),
                pl.BlockSpec((TB, W, C), lambda m: (m, 0, 0)),
            ],
            out_specs=pl.BlockSpec((TB, out_w, C), lambda m: (m, 0, 0)),
        ),
        compiler_params=pltpu.CompilerParams(
            dimension_semantics=("parallel",),
            vmem_limit_bytes=VMEM_LIMIT_BYTES),
    )(Aw, t)
    return out.reshape(N, out_h, out_w, C)


def bn_fold(gamma, beta, mean, var, eps=1e-5):
    """BatchNorm2d inference -> per-channel (scale, shift)."""
    scale = gamma / jnp.sqrt(var + eps)
    shift = beta - mean * scale
    return scale, shift


# ---------------------------------------------------------------------------
# Parameter init (deterministic, synthetic)
# ---------------------------------------------------------------------------
class _KeyGen:
    def __init__(self, key):
        self.key, self.i = key, 0

    def __call__(self):
        self.i += 1
        return jax.random.fold_in(self.key, self.i)


def init_params(key):
    kg = _KeyGen(key)
    w = lambda shape, s=0.05: s * jax.random.normal(kg(), shape, jnp.float32)
    b = lambda c: 0.05 * jax.random.normal(kg(), (c,), jnp.float32)
    bn = lambda c: (1.0 + 0.1 * jax.random.normal(kg(), (c,), jnp.float32),     # gamma
                    0.1 * jax.random.normal(kg(), (c,), jnp.float32),           # beta
                    0.1 * jax.random.normal(kg(), (c,), jnp.float32),           # running_mean
                    0.5 + jnp.abs(jax.random.normal(kg(), (c,), jnp.float32)))  # running_var
    half = CURR_DIM // 2
    p = {}
    # flt = convolution(3, OUT_DIM, CURR_DIM) : conv3x3 (no bias) + BN + ReLU
    p['flt_w'] = w((3, 3, OUT_DIM, CURR_DIM));      p['flt_bn'] = bn(CURR_DIM)
    # Base(dim=CURR_DIM, shp=SHP)
    p['p1_w'] = w((3, 3, CURR_DIM, half));          p['p1_bn'] = bn(half)
    p['p_conv1_w'] = w((3, 3, half, CURR_DIM));     p['p_bn1'] = bn(CURR_DIM)
    p['conv1_w'] = w((CURR_DIM, CURR_DIM));         p['bn1'] = bn(CURR_DIM)
    p['conv2_w'] = w((3, 3, CURR_DIM, CURR_DIM));   p['conv2_bn'] = bn(CURR_DIM)
    # heads = make_kp_layer(CURR_DIM, CONV_DIM, out): conv3x3+bias+ReLU, conv1x1+bias
    for name, odim in (('hm', NCLS), ('emb', 1), ('reg', 2)):
        p[name + '_w1'] = w((3, 3, CURR_DIM, CONV_DIM)); p[name + '_b1'] = b(CONV_DIM)
        p[name + '_w2'] = w((CONV_DIM, odim));           p[name + '_b2'] = b(odim)
    return p


# ---------------------------------------------------------------------------
# Mdl forward
# ---------------------------------------------------------------------------
def mdl_forward(params, x_nchw, point_list_, split, sz):
    p = params

    # ft (FCN-ResNet50 backbone) -> see TODO(synk) at top; x_nchw is its 'out'.
    x = jnp.transpose(x_nchw, (0, 2, 3, 1)).astype(jnp.bfloat16)  # NCHW -> NHWC

    # flt: conv3x3 + BN + ReLU
    s, t = bn_fold(*p['flt_bn'])
    x = conv3x3(x, p['flt_w'], s, t, relu=True)

    # ---- Base ----
    s, t = bn_fold(*p['p1_bn'])
    pool1 = conv3x3(x, p['p1_w'], s, t, relu=True)            # p1_conv1
    pool1 = upsample_bilinear(pool1, SHP, SHP)                # up(pool1)

    xu = upsample_bilinear(x, SHP, SHP)                       # up(x)
    s, t = bn_fold(*p['bn1'])
    bn1 = conv1x1(xu, p['conv1_w'], s, t, relu=False)         # conv1 + bn1

    # p_conv1 + p_bn1, with relu(pool1 + bn1) fused into the epilogue
    s, t = bn_fold(*p['p_bn1'])
    fused = conv3x3(pool1, p['p_conv1_w'], s, t, relu=True, add=bn1)

    s, t = bn_fold(*p['conv2_bn'])
    out = conv3x3(fused, p['conv2_w'], s, t, relu=True)       # conv2

    # ---- heads (fused) ----
    # One conv3x3 with the three w1's concatenated along Cout (+bias, ReLU).
    w1 = jnp.concatenate([p['hm_w1'], p['emb_w1'], p['reg_w1']], axis=-1)
    b1 = jnp.concatenate([p['hm_b1'], p['emb_b1'], p['reg_b1']])
    hid = conv3x3(out, w1, None, b1, relu=True)

    # One 1x1 matmul with a block-diagonal w2 (Cout = NCLS + 1 + 2 = 8 lanes;
    # partial stores accepted — last, smallest kernel).
    n_out = NCLS + 1 + 2
    w2 = jnp.zeros((3 * CONV_DIM, n_out), jnp.float32)
    w2 = w2.at[:CONV_DIM, :NCLS].set(p['hm_w2'])
    w2 = w2.at[CONV_DIM:2 * CONV_DIM, NCLS:NCLS + 1].set(p['emb_w2'])
    w2 = w2.at[2 * CONV_DIM:, NCLS + 1:].set(p['reg_w2'])
    b2 = jnp.concatenate([p['hm_b2'], p['emb_b2'], p['reg_b2']])
    heads = conv1x1(hid, w2, None, b2, relu=False, out_dtype=jnp.float32)

    hm = heads[..., :NCLS]
    emb = heads[..., NCLS:NCLS + 1]
    reg = heads[..., NCLS + 1:]
    to_nchw = lambda a: jnp.transpose(a, (0, 3, 1, 2))
    return {'type': 'poolfcnNet',
            'op': (to_nchw(hm), to_nchw(emb), to_nchw(reg)),
            'pnl': point_list_}


# ---------------------------------------------------------------------------
if __name__ == "__main__":
    key = jax.random.PRNGKey(0)
    params = init_params(jax.random.fold_in(key, 1))
    # x = backbone feature map ('out' of the FCN-ResNet50), NCHW
    x = jax.random.normal(jax.random.fold_in(key, 2),
                          (BATCH, OUT_DIM, H_IN, W_IN), jnp.float32)
    point_list = jnp.zeros((BATCH, 4, 2), jnp.float32)

    result = mdl_forward(params, x, point_list, split=None, sz=None)
    hm, emb, reg = result['op']
    jax.block_until_ready((hm, emb, reg))

    assert result['type'] == 'poolfcnNet'
    assert hm.shape == (BATCH, NCLS, SHP, SHP)
    assert emb.shape == (BATCH, 1, SHP, SHP)
    assert reg.shape == (BATCH, 2, SHP, SHP)
    assert jnp.all(jnp.isfinite(hm)) and jnp.all(jnp.isfinite(emb)) and jnp.all(jnp.isfinite(reg))
    print("KERNEL_OK")
</pallas_src>

<mosaic_0001>
module attributes {stable_mosaic.version = 11 : i64} {
  func.func @_conv3x3_kernel(%arg0: i32, %arg1: i32, %arg2: i32, %arg3: memref<1x8x8x64xbf16, #tpu.memory_space<vmem>>, %arg4: memref<1x1x8x64xbf16, #tpu.memory_space<vmem>>, %arg5: memref<1x1x8x64xbf16, #tpu.memory_space<vmem>>, %arg6: memref<9x64x32xbf16, #tpu.memory_space<vmem>>, %arg7: memref<1x32xf32, #tpu.memory_space<vmem>>, %arg8: memref<1x8x8x32xbf16, #tpu.memory_space<vmem>>, %arg9: memref<10x10x64xbf16, #tpu.memory_space<vmem>>) attributes {dimension_semantics = [#tpu.dimension_semantics<parallel>, #tpu.dimension_semantics<parallel>, #tpu.dimension_semantics<parallel>], iteration_bounds = array<i64: 2, 1, 1>, scalar_prefetch = 0 : i64, scratch_operands = 1 : i64, tpu.core_type = #tpu.core_type<tc>, window_params = [{transform_indices = @transform_0, window_bounds = array<i64: 1, 8, 8, 64>}, {transform_indices = @transform_1, window_bounds = array<i64: 1, 1, 8, 64>}, {transform_indices = @transform_2, window_bounds = array<i64: 1, 1, 8, 64>}, {transform_indices = @transform_3, window_bounds = array<i64: 9, 64, 32>}, {transform_indices = @transform_4, window_bounds = array<i64: 1, 32>}, {transform_indices = @transform_5, window_bounds = array<i64: 1, 8, 8, 32>}]} {
    %cst = arith.constant 0.000000e+00 : bf16
    %0 = vector.broadcast %cst : bf16 to vector<10x10x64xbf16>
    %c0 = arith.constant 0 : index
    %c0_0 = arith.constant 0 : index
    %c0_1 = arith.constant 0 : index
    %1 = vector.load %arg9[%c0, %c0_0, %c0_1] : memref<10x10x64xbf16, #tpu.memory_space<vmem>>, vector<10x10x64xbf16>
    tpu.vector_store %arg9[%c0, %c0_0, %c0_1], %0 {strides = array<i32>} : memref<10x10x64xbf16, #tpu.memory_space<vmem>>, vector<10x10x64xbf16>,
    %c0_2 = arith.constant 0 : index
    %c0_3 = arith.constant 0 : index
    %c0_4 = arith.constant 0 : index
    %c0_5 = arith.constant 0 : index
    %2 = vector.load %arg3[%c0_2, %c0_3, %c0_4, %c0_5] : memref<1x8x8x64xbf16, #tpu.memory_space<vmem>>, vector<1x8x8x64xbf16>
    %3 = vector.shape_cast %2 : vector<1x8x8x64xbf16> to vector<8x8x64xbf16>
    %c1 = arith.constant 1 : index
    %c1_6 = arith.constant 1 : index
    %c0_7 = arith.constant 0 : index
    %4 = vector.load %arg9[%c1, %c1_6, %c0_7] : memref<10x10x64xbf16, #tpu.memory_space<vmem>>, vector<8x8x64xbf16>
    tpu.vector_store %arg9[%c1, %c1_6, %c0_7], %3 {strides = array<i32>} : memref<10x10x64xbf16, #tpu.memory_space<vmem>>, vector<8x8x64xbf16>,
    %c0_i32 = arith.constant 0 : i32
    %5 = arith.cmpi sgt, %arg1, %c0_i32 : i32
    %6 = arith.extui %5 : i1 to i32
    %c0_i32_8 = arith.constant 0 : i32
    %7 = arith.cmpi ne, %6, %c0_i32_8 : i32
    scf.if %7 {
      %c0_75 = arith.constant 0 : index
      %c0_76 = arith.constant 0 : index
      %c0_77 = arith.constant 0 : index
      %c0_78 = arith.constant 0 : index
      %74 = vector.load %arg4[%c0_75, %c0_76, %c0_77, %c0_78] : memref<1x1x8x64xbf16, #tpu.memory_space<vmem>>, vector<1x1x8x64xbf16>
      %75 = vector.shape_cast %74 : vector<1x1x8x64xbf16> to vector<1x8x64xbf16>
      %c0_79 = arith.constant 0 : index
      %c1_80 = arith.constant 1 : index
      %c0_81 = arith.constant 0 : index
      %76 = vector.load %arg9[%c0_79, %c1_80, %c0_81] : memref<10x10x64xbf16, #tpu.memory_space<vmem>>, vector<1x8x64xbf16>
      tpu.vector_store %arg9[%c0_79, %c1_80, %c0_81], %75 {strides = array<i32>} : memref<10x10x64xbf16, #tpu.memory_space<vmem>>, vector<1x8x64xbf16>,
    } else {
    }
    %c0_i32_9 = arith.constant 0 : i32
    %8 = arith.cmpi slt, %arg1, %c0_i32_9 : i32
    %9 = arith.extui %8 : i1 to i32
    %c0_i32_10 = arith.constant 0 : i32
    %10 = arith.cmpi ne, %9, %c0_i32_10 : i32
    scf.if %10 {
      %c0_75 = arith.constant 0 : index
      %c0_76 = arith.constant 0 : index
      %c0_77 = arith.constant 0 : index
      %c0_78 = arith.constant 0 : index
      %74 = vector.load %arg5[%c0_75, %c0_76, %c0_77, %c0_78] : memref<1x1x8x64xbf16, #tpu.memory_space<vmem>>, vector<1x1x8x64xbf16>
      %75 = vector.shape_cast %74 : vector<1x1x8x64xbf16> to vector<1x8x64xbf16>
      %c9 = arith.constant 9 : index
      %c1_79 = arith.constant 1 : index
      %c0_80 = arith.constant 0 : index
      %76 = vector.load %arg9[%c9, %c1_79, %c0_80] : memref<10x10x64xbf16, #tpu.memory_space<vmem>>, vector<1x8x64xbf16>
      tpu.vector_store %arg9[%c9, %c1_79, %c0_80], %75 {strides = array<i32>} : memref<10x10x64xbf16, #tpu.memory_space<vmem>>, vector<1x8x64xbf16>,
    } else {
    }
    %cst_11 = arith.constant 0.000000e+00 : f32
    %11 = vector.broadcast %cst_11 : f32 to vector<64x32xf32>
    %c0_12 = arith.constant 0 : index
    %c0_13 = arith.constant 0 : index
    %c0_14 = arith.constant 0 : index
    %12 = vector.load %arg9[%c0_12, %c0_13, %c0_14] : memref<10x10x64xbf16, #tpu.memory_space<vmem>>, vector<8x8x64xbf16>
    %13 = vector.shape_cast %12 : vector<8x8x64xbf16> to vector<64x64xbf16>
    %c0_15 = arith.constant 0 : index
    %c0_16 = arith.constant 0 : index
    %c0_17 = arith.constant 0 : index
    %14 = vector.load %arg6[%c0_15, %c0_16, %c0_17] : memref<9x64x32xbf16, #tpu.memory_space<vmem>>, vector<1x64x32xbf16>
    %15 = vector.shape_cast %14 : vector<1x64x32xbf16> to vector<64x32xbf16>
    %cst_18 = arith.constant dense<0.000000e+00> : vector<64x32xf32>
    %16 = tpu.matmul %13, %15, %cst_18 {dimension_numbers = #tpu.dot_dimension_numbers<[1], [0], [0], [1], [0, 0, 1, 1], [], []>} : vector<64x64xbf16>, vector<64x32xbf16>, vector<64x32xf32> -> vector<64x32xf32>
    %17 = arith.addf %11, %16 : vector<64x32xf32>
    %c0_19 = arith.constant 0 : index
    %c1_20 = arith.constant 1 : index
    %c0_21 = arith.constant 0 : index
    %18 = vector.load %arg9[%c0_19, %c1_20, %c0_21] : memref<10x10x64xbf16, #tpu.memory_space<vmem>>, vector<8x8x64xbf16>
    %19 = vector.shape_cast %18 : vector<8x8x64xbf16> to vector<64x64xbf16>
    %c1_22 = arith.constant 1 : index
    %c0_23 = arith.constant 0 : index
    %c0_24 = arith.constant 0 : index
    %20 = vector.load %arg6[%c1_22, %c0_23, %c0_24] : memref<9x64x32xbf16, #tpu.memory_space<vmem>>, vector<1x64x32xbf16>
    %21 = vector.shape_cast %20 : vector<1x64x32xbf16> to vector<64x32xbf16>
    %cst_25 = arith.constant dense<0.000000e+00> : vector<64x32xf32>
    %22 = tpu.matmul %19, %21, %cst_25 {dimension_numbers = #tpu.dot_dimension_numbers<[1], [0], [0], [1], [0, 0, 1, 1], [], []>} : vector<64x64xbf16>, vector<64x32xbf16>, vector<64x32xf32> -> vector<64x32xf32>
    %23 = arith.addf %17, %22 : vector<64x32xf32>
    %c0_26 = arith.constant 0 : index
    %c2 = arith.constant 2 : index
    %c0_27 = arith.constant 0 : index
    %24 = vector.load %arg9[%c0_26, %c2, %c0_27] : memref<10x10x64xbf16, #tpu.memory_space<vmem>>, vector<8x8x64xbf16>
    %25 = vector.shape_cast %24 : vector<8x8x64xbf16> to vector<64x64xbf16>
    %c2_28 = arith.constant 2 : index
    %c0_29 = arith.constant 0 : index
    %c0_30 = arith.constant 0 : index
    %26 = vector.load %arg6[%c2_28, %c0_29, %c0_30] : memref<9x64x32xbf16, #tpu.memory_space<vmem>>, vector<1x64x32xbf16>
    %27 = vector.shape_cast %26 : vector<1x64x32xbf16> to vector<64x32xbf16>
    %cst_31 = arith.constant dense<0.000000e+00> : vector<64x32xf32>
    %28 = tpu.matmul %25, %27, %cst_31 {dimension_numbers = #tpu.dot_dimension_numbers<[1], [0], [0], [1], [0, 0, 1, 1], [], []>} : vector<64x64xbf16>, vector<64x32xbf16>, vector<64x32xf32> -> vector<64x32xf32>
    %29 = arith.addf %23, %28 : vector<64x32xf32>
    %c1_32 = arith.constant 1 : index
    %c0_33 = arith.constant 0 : index
    %c0_34 = arith.constant 0 : index
    %30 = vector.load %arg9[%c1_32, %c0_33, %c0_34] : memref<10x10x64xbf16, #tpu.memory_space<vmem>>, vector<8x8x64xbf16>
    %31 = vector.shape_cast %30 : vector<8x8x64xbf16> to vector<64x64xbf16>
    %c3 = arith.constant 3 : index
    %c0_35 = arith.constant 0 : index
    %c0_36 = arith.constant 0 : index
    %32 = vector.load %arg6[%c3, %c0_35, %c0_36] : memref<9x64x32xbf16, #tpu.memory_space<vmem>>, vector<1x64x32xbf16>
    %33 = vector.shape_cast %32 : vector<1x64x32xbf16> to vector<64x32xbf16>
    %cst_37 = arith.constant dense<0.000000e+00> : vector<64x32xf32>
    %34 = tpu.matmul %31, %33, %cst_37 {dimension_numbers = #tpu.dot_dimension_numbers<[1], [0], [0], [1], [0, 0, 1, 1], [], []>} : vector<64x64xbf16>, vector<64x32xbf16>, vector<64x32xf32> -> vector<64x32xf32>
    %35 = arith.addf %29, %34 : vector<64x32xf32>
    %c1_38 = arith.constant 1 : index
    %c1_39 = arith.constant 1 : index
    %c0_40 = arith.constant 0 : index
    %36 = vector.load %arg9[%c1_38, %c1_39, %c0_40] : memref<10x10x64xbf16, #tpu.memory_space<vmem>>, vector<8x8x64xbf16>
    %37 = vector.shape_cast %36 : vector<8x8x64xbf16> to vector<64x64xbf16>
    %c4 = arith.constant 4 : index
    %c0_41 = arith.constant 0 : index
    %c0_42 = arith.constant 0 : index
    %38 = vector.load %arg6[%c4, %c0_41, %c0_42] : memref<9x64x32xbf16, #tpu.memory_space<vmem>>, vector<1x64x32xbf16>
    %39 = vector.shape_cast %38 : vector<1x64x32xbf16> to vector<64x32xbf16>
    %cst_43 = arith.constant dense<0.000000e+00> : vector<64x32xf32>
    %40 = tpu.matmul %37, %39, %cst_43 {dimension_numbers = #tpu.dot_dimension_numbers<[1], [0], [0], [1], [0, 0, 1, 1], [], []>} : vector<64x64xbf16>, vector<64x32xbf16>, vector<64x32xf32> -> vector<64x32xf32>
    %41 = arith.addf %35, %40 : vector<64x32xf32>
    %c1_44 = arith.constant 1 : index
    %c2_45 = arith.constant 2 : index
    %c0_46 = arith.constant 0 : index
    %42 = vector.load %arg9[%c1_44, %c2_45, %c0_46] : memref<10x10x64xbf16, #tpu.memory_space<vmem>>, vector<8x8x64xbf16>
    %43 = vector.shape_cast %42 : vector<8x8x64xbf16> to vector<64x64xbf16>
    %c5 = arith.constant 5 : index
    %c0_47 = arith.constant 0 : index
    %c0_48 = arith.constant 0 : index
    %44 = vector.load %arg6[%c5, %c0_47, %c0_48] : memref<9x64x32xbf16, #tpu.memory_space<vmem>>, vector<1x64x32xbf16>
    %45 = vector.shape_cast %44 : vector<1x64x32xbf16> to vector<64x32xbf16>
    %cst_49 = arith.constant dense<0.000000e+00> : vector<64x32xf32>
    %46 = tpu.matmul %43, %45, %cst_49 {dimension_numbers = #tpu.dot_dimension_numbers<[1], [0], [0], [1], [0, 0, 1, 1], [], []>} : vector<64x64xbf16>, vector<64x32xbf16>, vector<64x32xf32> -> vector<64x32xf32>
    %47 = arith.addf %41, %46 : vector<64x32xf32>
    %c2_50 = arith.constant 2 : index
    %c0_51 = arith.constant 0 : index
    %c0_52 = arith.constant 0 : index
    %48 = vector.load %arg9[%c2_50, %c0_51, %c0_52] : memref<10x10x64xbf16, #tpu.memory_space<vmem>>, vector<8x8x64xbf16>
    %49 = vector.shape_cast %48 : vector<8x8x64xbf16> to vector<64x64xbf16>
    %c6 = arith.constant 6 : index
    %c0_53 = arith.constant 0 : index
    %c0_54 = arith.constant 0 : index
    %50 = vector.load %arg6[%c6, %c0_53, %c0_54] : memref<9x64x32xbf16, #tpu.memory_space<vmem>>, vector<1x64x32xbf16>
    %51 = vector.shape_cast %50 : vector<1x64x32xbf16> to vector<64x32xbf16>
    %cst_55 = arith.constant dense<0.000000e+00> : vector<64x32xf32>
    %52 = tpu.matmul %49, %51, %cst_55 {dimension_numbers = #tpu.dot_dimension_numbers<[1], [0], [0], [1], [0, 0, 1, 1], [], []>} : vector<64x64xbf16>, vector<64x32xbf16>, vector<64x32xf32> -> vector<64x32xf32>
    %53 = arith.addf %47, %52 : vector<64x32xf32>
    %c2_56 = arith.constant 2 : index
    %c1_57 = arith.constant 1 : index
    %c0_58 = arith.constant 0 : index
    %54 = vector.load %arg9[%c2_56, %c1_57, %c0_58] : memref<10x10x64xbf16, #tpu.memory_space<vmem>>, vector<8x8x64xbf16>
    %55 = vector.shape_cast %54 : vector<8x8x64xbf16> to vector<64x64xbf16>
    %c7 = arith.constant 7 : index
    %c0_59 = arith.constant 0 : index
    %c0_60 = arith.constant 0 : index
    %56 = vector.load %arg6[%c7, %c0_59, %c0_60] : memref<9x64x32xbf16, #tpu.memory_space<vmem>>, vector<1x64x32xbf16>
    %57 = vector.shape_cast %56 : vector<1x64x32xbf16> to vector<64x32xbf16>
    %cst_61 = arith.constant dense<0.000000e+00> : vector<64x32xf32>
    %58 = tpu.matmul %55, %57, %cst_61 {dimension_numbers = #tpu.dot_dimension_numbers<[1], [0], [0], [1], [0, 0, 1, 1], [], []>} : vector<64x64xbf16>, vector<64x32xbf16>, vector<64x32xf32> -> vector<64x32xf32>
    %59 = arith.addf %53, %58 : vector<64x32xf32>
    %c2_62 = arith.constant 2 : index
    %c2_63 = arith.constant 2 : index
    %c0_64 = arith.constant 0 : index
    %60 = vector.load %arg9[%c2_62, %c2_63, %c0_64] : memref<10x10x64xbf16, #tpu.memory_space<vmem>>, vector<8x8x64xbf16>
    %61 = vector.shape_cast %60 : vector<8x8x64xbf16> to vector<64x64xbf16>
    %c8 = arith.constant 8 : index
    %c0_65 = arith.constant 0 : index
    %c0_66 = arith.constant 0 : index
    %62 = vector.load %arg6[%c8, %c0_65, %c0_66] : memref<9x64x32xbf16, #tpu.memory_space<vmem>>, vector<1x64x32xbf16>
    %63 = vector.shape_cast %62 : vector<1x64x32xbf16> to vector<64x32xbf16>
    %cst_67 = arith.constant dense<0.000000e+00> : vector<64x32xf32>
    %64 = tpu.matmul %61, %63, %cst_67 {dimension_numbers = #tpu.dot_dimension_numbers<[1], [0], [0], [1], [0, 0, 1, 1], [], []>} : vector<64x64xbf16>, vector<64x32xbf16>, vector<64x32xf32> -> vector<64x32xf32>
    %65 = arith.addf %59, %64 : vector<64x32xf32>
    %c0_68 = arith.constant 0 : index
    %c0_69 = arith.constant 0 : index
    %66 = vector.load %arg7[%c0_68, %c0_69] : memref<1x32xf32, #tpu.memory_space<vmem>>, vector<1x32xf32>
    %67 = vector.broadcast %66 : vector<1x32xf32> to vector<64x32xf32>
    %68 = arith.addf %65, %67 : vector<64x32xf32>
    %cst_70 = arith.constant 0.000000e+00 : f32
    %69 = vector.broadcast %cst_70 : f32 to vector<64x32xf32>
    %70 = arith.maximumf %68, %69 : vector<64x32xf32>
    %71 = vector.shape_cast %70 : vector<64x32xf32> to vector<1x8x8x32xf32>
    %72 = arith.truncf %71 : vector<1x8x8x32xf32> to vector<1x8x8x32xbf16>
    %c0_71 = arith.constant 0 : index
    %c0_72 = arith.constant 0 : index
    %c0_73 = arith.constant 0 : index
    %c0_74 = arith.constant 0 : index
    %73 = vector.load %arg8[%c0_71, %c0_72, %c0_73, %c0_74] : memref<1x8x8x32xbf16, #tpu.memory_space<vmem>>, vector<1x8x8x32xbf16>
    tpu.vector_store %arg8[%c0_71, %c0_72, %c0_73, %c0_74], %72 {strides = array<i32>} : memref<1x8x8x32xbf16, #tpu.memory_space<vmem>>, vector<1x8x8x32xbf16>,
    return
  }
  func.func @transform_0(%arg0: i32, %arg1: i32, %arg2: i32) -> (i32, i32, i32, i32) {
    %c0_i32 = arith.constant 0 : i32
    %c0_i32_0 = arith.constant 0 : i32
    %c0_i32_1 = arith.constant 0 : i32
    return %arg0, %arg1, %c0_i32, %c0_i32_0 : i32, i32, i32, i32
  }
  func.func @transform_1(%arg0: i32, %arg1: i32, %arg2: i32) -> (i32, i32, i32, i32) {
    %c8_i32 = arith.constant 8 : i32
    %0 = arith.muli %arg1, %c8_i32 : i32
    %c1_i32 = arith.constant 1 : i32
    %1 = arith.subi %0, %c1_i32 : i32
    %c0_i32 = arith.constant 0 : i32
    %2 = arith.maxsi %1, %c0_i32 : i32
    %c0_i32_0 = arith.constant 0 : i32
    %c0_i32_1 = arith.constant 0 : i32
    %c0_i32_2 = arith.constant 0 : i32
    return %arg0, %2, %c0_i32_0, %c0_i32_1 : i32, i32, i32, i32
  }
  func.func @transform_2(%arg0: i32, %arg1: i32, %arg2: i32) -> (i32, i32, i32, i32) {
    %c8_i32 = arith.constant 8 : i32
    %0 = arith.muli %arg1, %c8_i32 : i32
    %c8_i32_0 = arith.constant 8 : i32
    %1 = arith.addi %0, %c8_i32_0 : i32
    %c7_i32 = arith.constant 7 : i32
    %2 = arith.minsi %1, %c7_i32 : i32
    %c0_i32 = arith.constant 0 : i32
    %c0_i32_1 = arith.constant 0 : i32
    %c0_i32_2 = arith.constant 0 : i32
    return %arg0, %2, %c0_i32, %c0_i32_1 : i32, i32, i32, i32
  }
  func.func @transform_3(%arg0: i32, %arg1: i32, %arg2: i32) -> (i32, i32, i32) {
    %c0_i32 = arith.constant 0 : i32
    %c0_i32_0 = arith.constant 0 : i32
    %c0_i32_1 = arith.constant 0 : i32
    return %c0_i32, %c0_i32_0, %arg2 : i32, i32, i32
  }
  func.func @transform_4(%arg0: i32, %arg1: i32, %arg2: i32) -> (i32, i32) {
    %c0_i32 = arith.constant 0 : i32
    %c0_i32_0 = arith.constant 0 : i32
    return %c0_i32, %arg2 : i32, i32
  }
  func.func @transform_5(%arg0: i32, %arg1: i32, %arg2: i32) -> (i32, i32, i32, i32) {
    %c0_i32 = arith.constant 0 : i32
    %c0_i32_0 = arith.constant 0 : i32
    return %arg0, %arg1, %c0_i32, %arg2 : i32, i32, i32, i32
  }
}

</mosaic_0001>

<bundles_post_ra>
// kernel: tpu_custom_call.1
= control target key start
LH: loop header
LB: loop body
LE: loop exit
PB: predicated region body
PF: predicated region fallthrough
CT: control target
= control target key end

     0   :  { %10 = vsyncpa [#allocation4], 0  ;;  %s3941_s0 = inlined_call_operand.vmem [shape: bf16[2,8,8,64], index: 0, kind: input, shape index: {}]   ;;  %s3942_s1 = inlined_call_operand.vmem [shape: bf16[2,8,8,64], index: 1, kind: input, shape index: {}]   ;;  %s3943_s2 = inlined_call_operand.vmem [shape: bf16[2,8,8,64], index: 2, kind: input, shape index: {}]   ;;  %s3944_s3 = inlined_call_operand.vmem [shape: bf16[9,64,32], index: 3, kind: input, shape index: {}]   ;;  %s3945_s4 = inlined_call_operand.vmem [shape: f32[1,32], index: 4, kind: input, shape index: {}]   ;;  %s3946_s5 = inlined_call_operand.hbm [shape: bf16[2,8,8,32], index: 5, kind: output, shape index: {}]  }
   0x1   :  { %12 = vsyncpa [#allocation4 + $0x1], 0  ;;  %s3305_s18 = smov 0   ;;  %s3307_s19 = smov 0  }
   0x2   :  { %s3309_s20 = smov 0   ;;  %s3311_s1 = smov 0  }
   0x3   :  { %s3313_s2 = smov 0   ;;  %s3315_s21 = smov 0  }
   0x4 LB: > { %s2577_s22 = sadd.s32 4294967295, %s3269_s21   ;;  %s2578_s23 = sadd.s32 4294967294, %s3269_s21   ;;  %s3269_s21 = sphi %s3315_s21, %s18_s21   ;;  %s3265_s2 = sphi %s3313_s2, %s3961_s2   ;;  %s3261_s1 = sphi %s3311_s1, %s3960_s1   ;;  %s3257_s20 = sphi %s3309_s20, %s3959_s20   ;;  %s3253_s19 = sphi %s3307_s19, %s3958_s19   ;;  %s3249_s18 = sphi %s3305_s18, %s3957_s18  }
   0x5   : > { %s37_s24 = sadd.s32 1, %s3265_s2  ;;  %s200_s25 = sadd.s32 1, %s3257_s20 }
   0x6   : > { %p39_p0 = scmp.ge.s32.totalorder %s37_s24, 2  ;;  %p210_p1 = scmp.ne.s32.totalorder %s3257_s20, %s3253_s19 }
   0x7   : > { %p211_p2 = scmp.eq.s32.totalorder %s2577_s22, 1  ;;  %p216_p3 = scmp.ne.s32.totalorder %s3253_s19, %s3249_s18 }
   0x8   : > { %s3963_s24 = smov (%p39_p0, %s37_s24), 0  ;;  %p217_p5 = scmp.eq.s32.totalorder %s2578_s23, 1 }
   0x9   : > { %p3345_p4 = por %p211_p2, %p210_p1  ;;  %s193_s27 = ssub.s32 %s3265_s2, %s3963_s24 }
   0xa   : > { %p2583_p6 = scmp.ge.s32.totalorder %s3269_s21, 1  ;;  %p198_p7 = scmp.eq.s32.totalorder %s193_s27, 0 }
   0xb   : > { %p3352_p8 = por %p217_p5, %p216_p3  ;;  %p299_p9 = scmp.lt.s32.totalorder %s3269_s21, 3 }
   0xc   : > { %s3358_s29 = scalar_select %p198_p7, %s3257_s20, %s200_s25  }
   0xd   : > { %p300_p10 = pnand %p2583_p6, %p299_p9 }
   0xe   : > { %v3144_v0 = vld [vmem:[%s3944_s3 + $0x20] sm:$0xff] (!%p300_p10)   ;;  %p363_p11 = scmp.lt.s32.totalorder (!%p300_p10), %s3261_s1, 1  ;;  %vm413_vm0 = vcmask (!%p300_p10), 519168   ;;  %v3146_v2 = vld [vmem:[%s3944_s3 + $0x28] sm:$0xff] (!%p300_p10)   ;;  %v3148_v4 = vld [vmem:[%s3944_s3 + $0x30] sm:$0xff] (!%p300_p10)   ;;  %v3271_v5 = vmov (!%p300_p10), 0  }
   0xf   : > { %303 = sbr.rel (%p300_p10) target bundleno = 391 (0x187), region = 40  ;;  %v3145_v1 = vld [vmem:[%s3944_s3 + $0x80] sm:$0xff] (!%p300_p10)   ;;  %2870 = vmatprep.subr.bf16.mxu1 (!%p300_p10), %v3144_v0  ;;  %v3147_v3 = vld [vmem:[%s3944_s3 + $0x88] sm:$0xff] (!%p300_p10)   ;;  %414 = vst.msk [vmem:[#allocation2] sm:$0xf] (!%p300_p10), %vm413_vm0, %v3271_v5  ;;  %v3149_v6 = vld [vmem:[%s3944_s3 + $0x90] sm:$0xff] (!%p300_p10)  }
  0x10   : > { %2934 = vmatprep.subr.bf16.mxu0 (!%p300_p10), %v3145_v1  ;;  %2871 = vmatpush3.bf16.msra.mxu1 (!%p300_p10), %v3144_v0  ;;  %417 = vst.msk [vmem:[#allocation2 + $0x8] sm:$0xf] (!%p300_p10), %vm413_vm0, %v3271_v5  ;;  %419 = vst.msk [vmem:[#allocation2 + $0x10] sm:$0xf] (!%p300_p10), %vm413_vm0, %v3271_v5  ;;  %vm415_vm1 = vcmask (!%p300_p10), 516096   ;;  %v3150_v7 = vld [vmem:[%s3944_s3 + $0x38] sm:$0xff] (!%p300_p10)  }
  0x11   : > { %2935 = vmatpush3.bf16.msra.mxu0 (!%p300_p10), %v3145_v1  ;;  %2872 = vmatprep.subr.bf16.mxu1 (!%p300_p10), %v3146_v2  ;;  %421 = vst.msk [vmem:[#allocation2 + $0x18] sm:$0xf] (!%p300_p10), %vm413_vm0, %v3271_v5  ;;  %423 = vst.msk [vmem:[#allocation2 + $0x20] sm:$0xf] (!%p300_p10), %vm413_vm0, %v3271_v5  ;;  %vm525_vm2 = vsmask.f32 (!%p300_p10), 7938 }
  0x12   : > { %425 = vst.msk [vmem:[#allocation2 + $0x28] sm:$0xf] (!%p300_p10), %vm413_vm0, %v3271_v5  ;;  %427 = vst.msk [vmem:[#allocation2 + $0x30] sm:$0xf] (!%p300_p10), %vm413_vm0, %v3271_v5  ;;  %2936 = vmatprep.subr.bf16.mxu0 (!%p300_p10), %v3147_v3  ;;  %v3151_v9 = vld [vmem:[%s3944_s3 + $0x98] sm:$0xff] (!%p300_p10)   ;;  %v3429_v19 = vld [vmem:[%s3944_s3] sm:$0xff] (!%p300_p10)  }
  0x13   : > { %429 = vst.msk [vmem:[#allocation2 + $0x38] sm:$0xf] (!%p300_p10), %vm413_vm0, %v3271_v5  ;;  %431 = vst.msk [vmem:[#allocation2 + $0x40] sm:$0xf] (!%p300_p10), %vm413_vm0, %v3271_v5  ;;  %vm531_vm3 = vsmask.f32 (!%p300_p10), 256 }
  0x14   : > { %433 = vst.msk [vmem:[#allocation2 + $0x48] sm:$0xf] (!%p300_p10), %vm413_vm0, %v3271_v5  ;;  %2873 = vmatpush3.bf16.msra.mxu1 (!%p300_p10), %v3146_v2  ;;  %vm3413_vm4 = vmand (!%p300_p10), %vm413_vm0, %vm525_vm2  ;;  %v3435_v25 = vld [vmem:[%s3944_s3 + $0xa0] sm:$0xff] (!%p300_p10)   ;;  %vm645_vm6 = vsmask.f32 (!%p300_p10), 3328  ;;  %vm805_vm9 = vcmask (!%p300_p10), 523264  }
  0x15   : > { %416 = vst.msk [vmem:[#allocation2 + $0x4] sm:$0x1] (!%p300_p10), %vm415_vm1, %v3271_v5  ;;  %418 = vst.msk [vmem:[#allocation2 + $0xc] sm:$0x1] (!%p300_p10), %vm415_vm1, %v3271_v5  ;;  %2937 = vmatpush3.bf16.msra.mxu0 (!%p300_p10), %v3147_v3  ;;  %2874 = vmatprep.subr.bf16.mxu1 (!%p300_p10), %v3148_v4  ;;  %vm646_vm7 = vsmask.f32 (!%p300_p10), 7440 }
  0x16   : > { %s364_s11 = scalar_select %p363_p11, %s3261_s1, 1  ;;  %420 = vst.msk [vmem:[#allocation2 + $0x14] sm:$0x1] %vm415_vm1, %v3271_v5  ;;  %422 = vst.msk [vmem:[#allocation2 + $0x1c] sm:$0x1] %vm415_vm1, %v3271_v5  ;;  %2938 = vmatprep.subr.bf16.mxu0 %v3149_v6  ;;  %vm1028_vm10 = vcmask 1042432  }
  0x17   : > { %424 = vst.msk [vmem:[#allocation2 + $0x24] sm:$0x1] %vm415_vm1, %v3271_v5  ;;  %426 = vst.msk [vmem:[#allocation2 + $0x2c] sm:$0x1] %vm415_vm1, %v3271_v5  ;;  %v527_v14 = vld [vmem:[#allocation2 + $0x8] sm:$0xf] }
  0x18   : > { %s2793_s16 = sshll.u32 %s364_s11, 5  ;;  %428 = vst.msk [vmem:[#allocation2 + $0x34] sm:$0x1] %vm415_vm1, %v3271_v5  ;;  %430 = vst.msk [vmem:[#allocation2 + $0x3c] sm:$0x1] %vm415_vm1, %v3271_v5  ;;  %2875 = vmatpush3.bf16.msra.mxu1 %v3148_v4  ;;  %vm1029_vm11 = vcmask 1046532  }
  0x19   : > { %s3393_s27 = scalar_lea.vmem %s3941_s0, %s2793_s16  ;;  %432 = vst.msk [vmem:[#allocation2 + $0x44] sm:$0x1] %vm415_vm1, %v3271_v5  ;;  %434 = vst.msk [vmem:[#allocation2 + $0x4c] sm:$0x1] %vm415_vm1, %v3271_v5  ;;  %v3417_v15 = vld [vmem:[#allocation2] sm:$0xf]  ;;  %2939 = vmatpush3.bf16.msra.mxu0 %v3149_v6  ;;  %2876 = vmatprep.subr.bf16.mxu1 %v3150_v7 }
  0x1a   : > { %v435_v8 = vld [vmem:[%s3393_s27] sm:$0xf]  ;;  %vm3420_vm5 = vmand %vm415_vm1, %vm531_vm3  ;;  %v649_v17 = vshrl.u32 %v3417_v15, 16  ;;  %v652_v18 = vshll.u32 %v3417_v15, 16  ;;  %v436_v20 = vld [vmem:[%s3393_s27 + $0x4] sm:$0xf]  ;;  %2940 = vmatprep.subr.bf16.mxu0 %v3151_v9 }
  0x1b   : > { %v444_v10 = vshrl.u32 %v435_v8, 16  ;;  %v447_v11 = vshll.u32 %v435_v8, 16  ;;  %v452_v24 = vshrl.u32 %v436_v20, 16  ;;  %v455_v32 = vshll.u32 %v436_v20, 16  ;;  %v536_v33 = vld [vmem:[#allocation2 + $0x10] sm:$0xf]  ;;  %vm3462_vm8 = vmor %vm645_vm6, %vm646_vm7 }
  0x1c   : > { %v533_v23 = vld [vmem:[#allocation2 + $0xc] sm:$0x1]  ;;  %v3437_v26 = vld [vmem:[#allocation2 + $0x4] sm:$0x1]  ;;  %v651_v27 = vrot.slane %v649_v17, 4  ;;  %v654_v28 = vrot.slane %v652_v18, 5  ;;  %2877 = vmatpush3.bf16.msra.mxu1 %v3150_v7  ;;  %vm3634_vm12 = vmor %vm1028_vm10, %vm1029_vm11 }
  0x1d   : > { %v446_v12 = vrot.slane %v444_v10, 7  ;;  %v454_v31 = vrot.slane %v452_v24, 7  ;;  %2941 = vmatpush3.bf16.msra.mxu0 %v3151_v9  ;;  %2886 = vmatprep.subr.bf16.mxu1 %v3429_v19  ;;  %v539_v34 = vld [vmem:[#allocation2 + $0x14] sm:$0x1]  ;;  %v437_v35 = vld [vmem:[%s3393_s27 + $0x8] sm:$0xf] }
  0x1e   : > { %2950 = vmatprep.subr.bf16.mxu0 %v3435_v25  ;;  %v460_v38 = vshrl.u32 %v437_v35, 16  ;;  %v463_v39 = vshll.u32 %v437_v35, 16  ;;  %v655_v40 = vor.u32 %v654_v28, %v651_v27  ;;  %v658_v41 = vshll.u32 %v3437_v26, 16  ;;  %v438_v42 = vld [vmem:[%s3393_s27 + $0xc] sm:$0xf]  ;;  %s359_s14 = sand.u32 1, %s3253_s19  }
  0x1f   : > { %v449_v21 = vor.u32 %v447_v11, %v446_v12  ;;  %v450_v22 = vrot.slane %v446_v12, 4  ;;  %v457_v36 = vor.u32 %v455_v32, %v454_v31  ;;  %v458_v37 = vrot.slane %v454_v31, 4  ;;  %v542_v46 = vld [vmem:[#allocation2 + $0x18] sm:$0xf]  ;;  %v545_v47 = vld [vmem:[#allocation2 + $0x1c] sm:$0x1] }
  0x20   : > { %v462_v45 = vrot.slane %v460_v38, 7  ;;  %v468_v48 = vshrl.u32 %v438_v42, 16  ;;  %v471_v49 = vshll.u32 %v438_v42, 16  ;;  %v656_v53 = vrot.slane %v655_v40, 4  ;;  %v548_v55 = vld [vmem:[#allocation2 + $0x20] sm:$0xf] }
  0x21   : > { %v528_v29 = vsel %vm3413_vm4, %v449_v21, %v527_v14  ;;  %v534_v30 = vsel %vm3420_vm5, %v450_v22, %v533_v23  ;;  %v537_v43 = vsel %vm3413_vm4, %v457_v36, %v536_v33  ;;  %v540_v44 = vsel %vm3420_vm5, %v458_v37, %v539_v34  ;;  %v551_v9 = vld [vmem:[#allocation2 + $0x24] sm:$0x1]  ;;  %s2584_s17 = sshll.u32 %s359_s14, 5  ;;  %s2797_s23 = sshll.u32 %s3261_s1, 9 }
  0x22   : > { %529 = vst [vmem:[#allocation2 + $0x8] sm:$0xf] %v528_v29  ;;  %535 = vst [vmem:[#allocation2 + $0xc] sm:$0x1] %v534_v30  ;;  %v465_v50 = vor.u32 %v463_v39, %v462_v45  ;;  %v466_v51 = vrot.slane %v462_v45, 4  ;;  %v470_v52 = vrot.slane %v468_v48, 7  ;;  %s3886_s6 = scalar_lea.hbm %s3946_s5, %s2797_s23 }
  0x23   : > { %538 = vst [vmem:[#allocation2 + $0x10] sm:$0xf] %v537_v43  ;;  %541 = vst [vmem:[#allocation2 + $0x14] sm:$0x1] %v540_v44  ;;  %v660_v54 = vrot.slane %v658_v41, 5  ;;  %vm2405_vm13 = vcmask 257024  }
  0x24   : > { %v543_v59 = vsel %vm3413_vm4, %v465_v50, %v542_v46  ;;  %v546_v60 = vsel %vm3420_vm5, %v466_v51, %v545_v47  ;;  %v473_v61 = vor.u32 %v471_v49, %v470_v52  ;;  %v474_v8 = vrot.slane %v470_v52, 4  ;;  %s361_s22 = scalar_lea.vmem [#allocation3], %s2584_s17  ;;  %s3895_s1 = scalar_lea.sflag [#allocation4], %s359_s14 }
  0x25   : > { %544 = vst [vmem:[#allocation2 + $0x18] sm:$0xf] %v543_v59  ;;  %547 = vst [vmem:[#allocation2 + $0x1c] sm:$0x1] %v546_v60  ;;  %v661_v10 = vsel %vm3462_vm8, %v656_v53, %v660_v54  ;;  %s2431_s25 = sshll.u32 %s361_s22, 4  ;;  %s3272_s8 = smov [#allocation3]   ;;  %s3888_s25 = int_to_ptr.vmem [resolvable:$true] %s2431_s25 }
  0x26   : > { %v549_v18 = vsel %vm3413_vm4, %v473_v61, %v548_v55  ;;  %v552_v40 = vsel %vm3420_vm5, %v474_v8, %v551_v9  ;;  %v439_v9 = vld [vmem:[%s3393_s27 + $0x10] sm:$0xf]  ;;  %s3191_s7 = scalar_lea.vmem %s3888_s25, 512  ;;  %s3195_s9 = sshll.u32 %s3272_s8, 4  ;;  %s3196_s9 = int_to_ptr.vmem [resolvable:$false] %s3195_s9 }
  0x27   : > { %550 = vst [vmem:[#allocation2 + $0x20] sm:$0xf] %v549_v18  ;;  %553 = vst [vmem:[#allocation2 + $0x24] sm:$0x1] %v552_v40  ;;  %p3192_p12 = scmp.ne.s32.totalorder %s3888_s25, %s3191_s7  ;;  %s3197_s10 = scalar_lea.vmem %s3196_s9, 1024 }
  0x28   : > { %p3198_p1 = scmp.lt.s32.totalorder %s3888_s25, %s3196_s9  ;;  %p3199_p2 = scmp.lt.s32.totalorder %s3197_s10, %s3191_s7 }
  0x29   : > { %v3452_v56 = vld [vmem:[#allocation2 + $0x8] sm:$0xf]  ;;  %v3454_v57 = vld [vmem:[#allocation2 + $0xc] sm:$0x1]  ;;  %p3193_p13 = pnand %p3192_p12, %p3345_p4 }
  0x2a   : > { %v1339_v58 = vld [vmem:[#allocation2 + $0x8] sm:$0xf]  ;;  %v663_v63 = vshrl.u32 %v3452_v56, 16  ;;  %v666_v0 = vshll.u32 %v3452_v56, 16  ;;  %v672_v1 = vshll.u32 %v3454_v57, 16  ;;  %p3200_p3 = por %p3199_p2, %p3198_p1 }
  0x2b   : > { %v3469_v2 = vld [vmem:[#allocation2 + $0xc] sm:$0x1]  ;;  %v1356_v3 = vshrl.u32 %v1339_v58, 16  ;;  %v1359_v4 = vshll.u32 %v1339_v58, 16  ;;  %v1341_v11 = vld [vmem:[#allocation2 + $0x10] sm:$0xf]  ;;  %p3194_p0 = pneg %p3193_p13 }
  0x2c   : > { %v1365_v5 = vshll.u32 %v3469_v2, 16  ;;  %v665_v6 = vrot.slane %v663_v63, 4  ;;  %v668_v7 = vrot.slane %v666_v0, 5  ;;  %v3474_v12 = vld [vmem:[#allocation2 + $0x14] sm:$0x1]  ;;  %v674_v21 = vrot.slane %v672_v1, 5 }
  0x2d   : > { %v1358_v14 = vrot.slane %v1356_v3, 4  ;;  %v1361_v17 = vrot.slane %v1359_v4, 5  ;;  %v1370_v22 = vshrl.u32 %v1341_v11, 16  ;;  %v1373_v23 = vshll.u32 %v1341_v11, 16  ;;  %v3478_v24 = vld [vmem:[#allocation2 + $0x10] sm:$0xf]  ;;  %p3201_p5 = pnand %p3200_p3, %p3194_p0 }
  0x2e   : > { %v669_v20 = vor.u32 %v668_v7, %v665_v6  ;;  %v1367_v28 = vrot.slane %v1365_v5, 5  ;;  %v1379_v29 = vshll.u32 %v3474_v12, 16  ;;  %v677_v30 = vshrl.u32 %v3478_v24, 16  ;;  %v3482_v34 = vld [vmem:[#allocation2 + $0x14] sm:$0x1] }
  0x2f   : > { %v1362_v27 = vor.u32 %v1361_v17, %v1358_v14  ;;  %v1372_v32 = vrot.slane %v1370_v22, 4  ;;  %v1375_v33 = vrot.slane %v1373_v23, 5  ;;  %v680_v35 = vshll.u32 %v3478_v24, 16  ;;  %v3485_v38 = vld [vmem:[#allocation2 + $0x18] sm:$0xf] }
  0x30   : > { %v670_v31 = vrot.slane %v669_v20, 4  ;;  %v1381_v37 = vrot.slane %v1379_v29, 5  ;;  %v3487_v39 = vld [vmem:[#allocation2 + $0x1c] sm:$0x1]  ;;  %v679_v43 = vrot.slane %v677_v30, 4  ;;  %v686_v47 = vshll.u32 %v3482_v34, 16 }
  0x31   : > { %v1363_v36 = vrot.slane %v1362_v27, 4  ;;  %v1376_v42 = vor.u32 %v1375_v33, %v1372_v32  ;;  %v682_v44 = vrot.slane %v680_v35, 5  ;;  %v691_v48 = vshrl.u32 %v3485_v38, 16  ;;  %v1343_v49 = vld [vmem:[#allocation2 + $0x18] sm:$0xf] }
  0x32   : > { %v675_v41 = vsel %vm3462_vm8, %v670_v31, %v674_v21  ;;  %v3497_v50 = vld [vmem:[#allocation2 + $0x1c] sm:$0x1]  ;;  %v694_v53 = vshll.u32 %v3485_v38, 16  ;;  %v700_v54 = vshll.u32 %v3487_v39, 16  ;;  %v688_v55 = vrot.slane %v686_v47, 5 }
  0x33   : > { %v2599_v45 = vcombine.low %v661_v10, %v675_v41  ;;  %v1368_v46 = vsel %vm3462_vm8, %v1363_v36, %v1367_v28  ;;  %v1377_v51 = vrot.slane %v1376_v42, 4  ;;  %v683_v52 = vor.u32 %v682_v44, %v679_v43  ;;  %v1345_v59 = vld [vmem:[#allocation2 + $0x20] sm:$0xf]  ;;  %v3510_v14 = vld [vmem:[#allocation2 + $0x24] sm:$0x1]  ;;  %v3154_v36 = vld [vmem:[%s3944_s3 + $0x8] sm:$0xff]  }
  0x34   : > { %v693_v58 = vrot.slane %v691_v48, 4  ;;  %v696_v63 = vrot.slane %v694_v53, 5  ;;  %v1384_v1 = vshrl.u32 %v1343_v49, 16  ;;  %v1387_v3 = vshll.u32 %v1343_v49, 16  ;;  %v440_v31 = vld [vmem:[%s3393_s27 + $0x14] sm:$0xf] }
  0x35   : > { %2878 = vmatprep.mubr.msk.bf16.mxu1 %vm805_vm9, %v2599_v45  ;;  %v1382_v60 = vsel %vm3462_vm8, %v1377_v51, %v1381_v37  ;;  %v684_v61 = vrot.slane %v683_v52, 4  ;;  %v1393_v4 = vshll.u32 %v3497_v50, 16  ;;  %v702_v6 = vrot.slane %v700_v54, 5  ;;  %v554_v37 = vld [vmem:[#allocation2 + $0x28] sm:$0xf] }
  0x36   : > { %v2679_v0 = vcombine.low %v1368_v46, %v1382_v60  ;;  %v697_v5 = vor.u32 %v696_v63, %v693_v58  ;;  %v1398_v7 = vshrl.u32 %v1345_v59, 16  ;;  %v1401_v8 = vshll.u32 %v1345_v59, 16  ;;  %v3519_v40 = vld [vmem:[#allocation2 + $0x20] sm:$0xf]  ;;  %v557_v44 = vld [vmem:[#allocation2 + $0x2c] sm:$0x1] }
  0x37   : > { %v1033_v10 = vrot.slane %v3437_v26, 5  ;;  %v689_v11 = vsel %vm3462_vm8, %v684_v61, %v688_v55  ;;  %v1386_v17 = vrot.slane %v1384_v1, 4  ;;  %v1389_v18 = vrot.slane %v1387_v3, 5  ;;  %v441_v45 = vld [vmem:[%s3393_s27 + $0x18] sm:$0xf]  ;;  %v3155_v51 = vld [vmem:[%s3944_s3 + $0xa8] sm:$0xff]  }
  0x38   : > { %2942 = vmatprep.mubr.msk.bf16.mxu0 %vm805_vm9, %v2679_v0  ;;  %v698_v20 = vrot.slane %v697_v5, 4  ;;  %v1400_v21 = vrot.slane %v1398_v7, 4  ;;  %v1403_v22 = vrot.slane %v1401_v8, 5  ;;  %v1407_v23 = vshll.u32 %v3510_v14, 16  ;;  %v442_v48 = vld [vmem:[%s3393_s27 + $0x1c] sm:$0xf] }
  0x39   : > { %v1390_v27 = vor.u32 %v1389_v18, %v1386_v17  ;;  %v1395_v28 = vrot.slane %v1393_v4, 5  ;;  %v476_v29 = vshrl.u32 %v439_v9, 16  ;;  %v479_v30 = vshll.u32 %v439_v9, 16  ;;  %v560_v55 = vld [vmem:[#allocation2 + $0x30] sm:$0xf]  ;;  %v3169_v26 = vld [vmem:[%s3944_s3 + $0x58] sm:$0xff]  }
  0x3a   : > { %v703_v32 = vsel %vm3462_vm8, %v698_v20, %v702_v6  ;;  %v1404_v33 = vor.u32 %v1403_v22, %v1400_v21  ;;  %v1409_v35 = vrot.slane %v1407_v23, 5  ;;  %v484_v47 = vshrl.u32 %v440_v31, 16  ;;  %v3156_v60 = vld [vmem:[%s3944_s3 + $0x10] sm:$0xff]   ;;  %v3541_v4 = vld [vmem:[#allocation2 + $0x24] sm:$0x1] }
  0x3b   : > { %v2600_v41 = vcombine.low %v689_v11, %v703_v32  ;;  %v1391_v42 = vrot.slane %v1390_v27, 4  ;;  %v478_v43 = vrot.slane %v476_v29, 7  ;;  %v705_v54 = vshrl.u32 %v3519_v40, 16  ;;  %v3157_v17 = vld [vmem:[%s3944_s3 + $0xb0] sm:$0xff]   ;;  %v566_v18 = vld [vmem:[#allocation2 + $0x38] sm:$0xf] }
  0x3c   : > { %v1405_v46 = vrot.slane %v1404_v33, 4  ;;  %v708_v59 = vshll.u32 %v3519_v40, 16  ;;  %v486_v61 = vrot.slane %v484_v47, 7  ;;  %v487_v63 = vshll.u32 %v440_v31, 16  ;;  %v569_v20 = vld [vmem:[#allocation2 + $0x3c] sm:$0x1] }
  0x3d   : > { %2879 = vmatmul.mubr.msk.bf16.vlgmr.msra.gmra.mrb[0].mxu1 %vm805_vm9, %v2600_v41  ;;  %v1396_v49 = vsel %vm3462_vm8, %v1391_v42, %v1395_v28  ;;  %v481_v52 = vor.u32 %v479_v30, %v478_v43  ;;  %v482_v53 = vrot.slane %v478_v43, 4  ;;  %v492_v7 = vshrl.u32 %v441_v45, 16  ;;  %v572_v30 = vld [vmem:[#allocation2 + $0x40] sm:$0xf]  ;;  %v575_v32 = vld [vmem:[#allocation2 + $0x44] sm:$0x1] }
  0x3e   : > { %2887 = vmatpush3.bf16.msra.mxu1 %v3429_v19  ;;  %v1410_v58 = vsel %vm3462_vm8, %v1405_v46, %v1409_v35  ;;  %v563_v19 = vld [vmem:[#allocation2 + $0x34] sm:$0x1]  ;;  %v489_v5 = vor.u32 %v487_v63, %v486_v61  ;;  %v490_v6 = vrot.slane %v486_v61, 4  ;;  %v495_v8 = vshll.u32 %v441_v45, 16  ;;  %v3159_v43 = vld [vmem:[%s3944_s3 + $0xb8] sm:$0xff]  }
  0x3f   : > { %v2680_v0 = vcombine.low %v1396_v49, %v1410_v58  ;;  %2888 = vmatprep.subr.bf16.mxu1 %v3154_v36  ;;  %v555_v1 = vsel %vm3413_vm4, %v481_v52, %v554_v37  ;;  %v558_v3 = vsel %vm3420_vm5, %v482_v53, %v557_v44  ;;  %v1037_v9 = vrot.slane %v3454_v57, 5  ;;  %v3564_v44 = vld [vmem:[%s3944_s3 + $0x40] sm:$0xff]  }
  0x40   : > { %556 = vst [vmem:[#allocation2 + $0x28] sm:$0xf] %v555_v1  ;;  %559 = vst [vmem:[#allocation2 + $0x2c] sm:$0x1] %v558_v3  ;;  %v707_v11 = vrot.slane %v705_v54, 4  ;;  %v500_v21 = vshrl.u32 %v442_v48, 16  ;;  %v561_v27 = vsel %vm3413_vm4, %v489_v5, %v560_v55  ;;  %v564_v28 = vsel %vm3420_vm5, %v490_v6, %v563_v19 }
  0x41   : > { %2943 = vmatmul.mubr.msk.bf16.vlgmr.msra.gmra.mrb[0].mxu0 %vm805_vm9, %v2680_v0  ;;  %v503_v22 = vshll.u32 %v442_v48, 16  ;;  %v710_v23 = vrot.slane %v708_v59, 5  ;;  %v494_v29 = vrot.slane %v492_v7, 7  ;;  %562 = vst [vmem:[#allocation2 + $0x30] sm:$0xf] %v561_v27  ;;  %v1623_v33 = vrot.slane %v3469_v2, 5 }
  0x42   : > { %2951 = vmatpush3.bf16.msra.mxu0 %v3435_v25  ;;  %2889 = vmatpush3.bf16.msra.mxu1 %v3154_v36  ;;  %565 = vst [vmem:[#allocation2 + $0x34] sm:$0x1] %v564_v28  ;;  %v502_v31 = vrot.slane %v500_v21, 7  ;;  %v3158_v25 = vld [vmem:[%s3944_s3 + $0x18] sm:$0xff]   ;;  %v714_v37 = vshll.u32 %v3541_v4, 16  ;;  %v1627_v61 = vrot.slane %v3474_v12, 5 }
  0x43   : > { %2952 = vmatprep.subr.bf16.mxu0 %v3155_v51  ;;  %2890 = vmatprep.subr.bf16.mxu1 %v3156_v60  ;;  %v497_v35 = vor.u32 %v495_v8, %v494_v29  ;;  %v498_v36 = vrot.slane %v494_v29, 4  ;;  %v711_v45 = vor.u32 %v710_v23, %v707_v11 }
  0x44   : > { %v505_v41 = vor.u32 %v503_v22, %v502_v31  ;;  %v506_v42 = vrot.slane %v502_v31, 4  ;;  %v716_v63 = vrot.slane %v714_v37, 5 }
  0x45   : > { %v567_v46 = vsel %vm3413_vm4, %v497_v35, %v566_v18  ;;  %v570_v47 = vsel %vm3420_vm5, %v498_v36, %v569_v20  ;;  %v712_v16 = vrot.slane %v711_v45, 4  ;;  %v3591_v18 = vld [vmem:[%s3944_s3 + $0xc0] sm:$0xff]  }
  0x46   : > { %2953 = vmatpush3.bf16.msra.mxu0 %v3155_v51  ;;  %2891 = vmatpush3.bf16.msra.mxu1 %v3156_v60  ;;  %568 = vst [vmem:[#allocation2 + $0x38] sm:$0xf] %v567_v46  ;;  %571 = vst [vmem:[#allocation2 + $0x3c] sm:$0x1] %v570_v47  ;;  %v573_v53 = vsel %vm3413_vm4, %v505_v41, %v572_v30  ;;  %v576_v51 = vsel %vm3420_vm5, %v506_v42, %v575_v32  ;;  %v1041_v32 = vrot.slane %v3482_v34, 5 }
  0x47   : > { %v3570_v48 = vld [vmem:[#allocation2 + $0x28] sm:$0xf]  ;;  %v3572_v49 = vld [vmem:[#allocation2 + $0x2c] sm:$0x1]  ;;  %2954 = vmatprep.subr.bf16.mxu0 %v3157_v17  ;;  %2892 = vmatprep.subr.bf16.mxu1 %v3158_v25  ;;  %574 = vst [vmem:[#allocation2 + $0x40] sm:$0xf] %v573_v53 }
  0x48   : > { %v1347_v52 = vld [vmem:[#allocation2 + $0x28] sm:$0xf]  ;;  %v719_v54 = vshrl.u32 %v3570_v48, 16  ;;  %v722_v55 = vshll.u32 %v3570_v48, 16  ;;  %v728_v58 = vshll.u32 %v3572_v49, 16 }
  0x49   : > { %v3581_v59 = vld [vmem:[#allocation2 + $0x2c] sm:$0x1]  ;;  %v1412_v60 = vshrl.u32 %v1347_v52, 16  ;;  %577 = vst [vmem:[#allocation2 + $0x44] sm:$0x1] %v576_v51  ;;  %v1415_v13 = vshll.u32 %v1347_v52, 16 }
  0x4a   : > { %v1421_v0 = vshll.u32 %v3581_v59, 16  ;;  %v721_v1 = vrot.slane %v719_v54, 4  ;;  %v724_v3 = vrot.slane %v722_v55, 5  ;;  %v1349_v19 = vld [vmem:[#allocation2 + $0x30] sm:$0xf]  ;;  %2955 = vmatpush3.bf16.msra.mxu0 %v3157_v17  ;;  %2893 = vmatpush3.bf16.msra.mxu1 %v3158_v25  ;;  %v730_v21 = vrot.slane %v728_v58, 5 }
  0x4b   : > { %v1414_v5 = vrot.slane %v1412_v60, 4  ;;  %v3585_v6 = vld [vmem:[#allocation2 + $0x34] sm:$0x1]  ;;  %v1417_v7 = vrot.slane %v1415_v13, 5  ;;  %v1426_v8 = vshrl.u32 %v1349_v19, 16  ;;  %v1429_v11 = vshll.u32 %v1349_v19, 16  ;;  %2956 = vmatprep.subr.bf16.mxu0 %v3159_v43  ;;  %2902 = vmatprep.subr.bf16.mxu1 %v3564_v44 }
  0x4c   : > { %v725_v20 = vor.u32 %v724_v3, %v721_v1  ;;  %v1423_v22 = vrot.slane %v1421_v0, 5  ;;  %v1435_v23 = vshll.u32 %v3585_v6, 16  ;;  %v3594_v17 = vld [vmem:[#allocation2 + $0x30] sm:$0xf]  ;;  %v3596_v30 = vld [vmem:[#allocation2 + $0x34] sm:$0x1]  ;;  %v717_v25 = vsel %vm3462_vm8, %v712_v16, %v716_v63 }
  0x4d   : > { %v1418_v27 = vor.u32 %v1417_v7, %v1414_v5  ;;  %v1428_v28 = vrot.slane %v1426_v8, 4  ;;  %v1431_v29 = vrot.slane %v1429_v11, 5  ;;  %v733_v31 = vshrl.u32 %v3594_v17, 16  ;;  %v3602_v37 = vld [vmem:[#allocation2 + $0x38] sm:$0xf] }
  0x4e   : > { %v726_v35 = vrot.slane %v725_v20, 4  ;;  %v1437_v36 = vrot.slane %v1435_v23, 5  ;;  %2957 = vmatpush3.bf16.msra.mxu0 %v3159_v43  ;;  %v3604_v45 = vld [vmem:[#allocation2 + $0x3c] sm:$0x1]  ;;  %v736_v47 = vshll.u32 %v3594_v17, 16  ;;  %v742_v53 = vshll.u32 %v3596_v30, 16 }
  0x4f   : > { %v1419_v41 = vrot.slane %v1418_v27, 4  ;;  %v1432_v42 = vor.u32 %v1431_v29, %v1428_v28  ;;  %v735_v46 = vrot.slane %v733_v31, 4  ;;  %2966 = vmatprep.subr.bf16.mxu0 %v3591_v18  ;;  %v747_v51 = vshrl.u32 %v3602_v37, 16  ;;  %v1351_v55 = vld [vmem:[#allocation2 + $0x38] sm:$0xf] }
  0x50   : > { %v731_v52 = vsel %vm3462_vm8, %v726_v35, %v730_v21  ;;  %v750_v54 = vshll.u32 %v3602_v37, 16  ;;  %v738_v63 = vrot.slane %v736_v47, 5  ;;  %v3615_v13 = vld [vmem:[#allocation2 + $0x3c] sm:$0x1]  ;;  %v1597_v0 = vld [vmem:[#allocation2 + $0x8] sm:$0xe] }
  0x51   : > { %v2601_v43 = vcombine.low %v717_v25, %v731_v52  ;;  %v1424_v58 = vsel %vm3462_vm8, %v1419_v41, %v1423_v22  ;;  %v1433_v60 = vrot.slane %v1432_v42, 4  ;;  %v744_v16 = vrot.slane %v742_v53, 5  ;;  %v1353_v5 = vld [vmem:[#allocation2 + $0x40] sm:$0xf]  ;;  %v1598_v7 = vld [vmem:[#allocation2 + $0x10] sm:$0xe] }
  0x52   : > { %v749_v1 = vrot.slane %v747_v51, 4  ;;  %v752_v3 = vrot.slane %v750_v54, 5  ;;  %v756_v19 = vshll.u32 %v3604_v45, 16  ;;  %v739_v11 = vor.u32 %v738_v63, %v735_v46  ;;  %v3621_v20 = vld [vmem:[#allocation2 + $0x44] sm:$0x1] }
  0x53   : > { %2882 = vmatprep.mubr.msk.bf16.mxu1 %vm805_vm9, %v2601_v43  ;;  %v1438_v8 = vsel %vm3462_vm8, %v1433_v60, %v1437_v36  ;;  %v1440_v21 = vshrl.u32 %v1351_v55, 16  ;;  %v1443_v22 = vshll.u32 %v1351_v55, 16  ;;  %v1449_v29 = vshll.u32 %v3615_v13, 16  ;;  %v1599_v52 = vld [vmem:[#allocation2 + $0x18] sm:$0xe] }
  0x54   : > { %v2681_v23 = vcombine.low %v1424_v58, %v1438_v8  ;;  %v753_v27 = vor.u32 %v752_v3, %v749_v1  ;;  %v758_v28 = vrot.slane %v756_v19, 5  ;;  %v740_v31 = vrot.slane %v739_v11, 4 }
  0x55   : > { %v1442_v25 = vrot.slane %v1440_v21, 4  ;;  %v1445_v35 = vrot.slane %v1443_v22, 5  ;;  %v1454_v41 = vshrl.u32 %v1353_v5, 16  ;;  %v1457_v47 = vshll.u32 %v1353_v5, 16  ;;  %v1601_v5 = vld [vmem:[#allocation2 + $0x28] sm:$0xe] }
  0x56   : > { %2946 = vmatprep.mubr.msk.bf16.mxu0 %vm805_vm9, %v2681_v23  ;;  %v754_v42 = vrot.slane %v753_v27, 4  ;;  %v1463_v36 = vshll.u32 %v3621_v20, 16  ;;  %v2691_v46 = vrot.slane %v1597_v0, 9  ;;  %v745_v53 = vsel %vm3462_vm8, %v740_v31, %v744_v16  ;;  %v1600_v0 = vld [vmem:[#allocation2 + $0x20] sm:$0xe] }
  0x57   : > { %v1446_v51 = vor.u32 %v1445_v35, %v1442_v25  ;;  %v1456_v54 = vrot.slane %v1454_v41, 4  ;;  %v2692_v55 = vrot.slane %v1598_v7, 9  ;;  %v1451_v58 = vrot.slane %v1449_v29, 5  ;;  %v1602_v23 = vld [vmem:[#allocation2 + $0x30] sm:$0xe] }
  0x58   : > { %v759_v43 = vsel %vm3462_vm8, %v754_v42, %v758_v28  ;;  %v1459_v60 = vrot.slane %v1457_v47, 5  ;;  %v2611_v63 = vcombine.low %v3417_v15, %v3452_v56  ;;  %v1045_v16 = vrot.slane %v3487_v39, 5  ;;  %v1603_v29 = vld [vmem:[#allocation2 + $0x38] sm:$0xe]  ;;  %v1004_v31 = vld [vmem:[#allocation2] sm:$0xe] }
  0x59   : > { %v2602_v3 = vcombine.low %v745_v53, %v759_v43  ;;  %v1447_v19 = vrot.slane %v1446_v51, 4  ;;  %v1631_v7 = vrot.slane %v3497_v50, 5  ;;  %v1465_v11 = vrot.slane %v1463_v36, 5  ;;  %v3163_v42 = vld [vmem:[%s3944_s3 + $0x48] sm:$0xff]   ;;  %v3171_v39 = vld [vmem:[%s3944_s3 + $0x60] sm:$0xff]  }
  0x5a   : > { %v1460_v8 = vor.u32 %v1459_v60, %v1456_v54  ;;  %v1635_v21 = vrot.slane %v3510_v14, 5  ;;  %v1624_v15 = vsel %vm3634_vm12, %v2691_v46, %v1623_v33  ;;  %v1628_v56 = vsel %vm3634_vm12, %v2692_v55, %v1627_v61  ;;  %v1005_v33 = vld [vmem:[#allocation2 + $0x8] sm:$0xe]  ;;  %v1604_v61 = vld [vmem:[#allocation2 + $0x40] sm:$0xe] }
  0x5b   : > { %2883 = vmatmul.mubr.msk.bf16.gmra.mrb[4].mxu1 %vm805_vm9, %v2602_v3  ;;  %v2693_v22 = vrot.slane %v1599_v52, 9  ;;  %v1452_v50 = vsel %vm3462_vm8, %v1447_v19, %v1451_v58  ;;  %v2694_v14 = vrot.slane %v1600_v0, 9  ;;  %v2695_v28 = vrot.slane %v1601_v5, 9  ;;  %v1007_v52 = vld [vmem:[#allocation2 + $0x18] sm:$0xe]  ;;  %v3164_v19 = vld [vmem:[%s3944_s3 + $0xc8] sm:$0xff]  }
  0x5c   : > { %v1461_v27 = vrot.slane %v1460_v8, 4  ;;  %2894 = vmatprep.mubr.msk.bf16.mxu1 %vm805_vm9, %v2611_v63  ;;  %v1639_v2 = vrot.slane %v3581_v59, 5  ;;  %v2707_v25 = vcombine.low %v1624_v15, %v1628_v56  ;;  %v2612_v41 = vcombine.low %v3478_v24, %v3485_v38  ;;  %v1006_v59 = vld [vmem:[#allocation2 + $0x10] sm:$0xe]  ;;  %v1008_v0 = vld [vmem:[#allocation2 + $0x20] sm:$0xe] }
  0x5d   : > { %v2696_v47 = vrot.slane %v1602_v23, 9  ;;  %v1643_v36 = vrot.slane %v3585_v6, 5  ;;  %v2613_v46 = vcombine.low %v3519_v40, %v3570_v48  ;;  %v2623_v53 = vrot.slane %v1004_v31, 9  ;;  %v3166_v40 = vld [vmem:[%s3944_s3 + $0x50] sm:$0xff]   ;;  %v1932_v23 = vld [vmem:[#allocation2 + $0x18] sm:$0xf] }
  0x5e   : > { %v1466_v12 = vsel %vm3462_vm8, %v1461_v27, %v1465_v11  ;;  %v2624_v51 = vrot.slane %v1005_v33, 9  ;;  %v1632_v24 = vsel %vm3634_vm12, %v2693_v22, %v1631_v7  ;;  %v1636_v38 = vsel %vm3634_vm12, %v2694_v14, %v1635_v21  ;;  %v1010_v56 = vld [vmem:[#allocation2 + $0x30] sm:$0xe]  ;;  %v3718_v14 = vld [vmem:[#allocation2 + $0x14] sm:$0x1] }
  0x5f   : > { %v2682_v35 = vcombine.low %v1452_v50, %v1466_v12  ;;  %v1640_v6 = vsel %vm3634_vm12, %v2695_v28, %v1639_v2  ;;  %v2697_v54 = vrot.slane %v1603_v29, 9  ;;  %v1644_v48 = vsel %vm3634_vm12, %v2696_v47, %v1643_v36 }
  0x60   : > { %v1647_v55 = vrot.slane %v3615_v13, 5  ;;  %v2698_v43 = vrot.slane %v1604_v61, 9  ;;  %v1651_v58 = vrot.slane %v3621_v20, 5  ;;  %v2625_v60 = vrot.slane %v1006_v59, 9  ;;  %v1009_v20 = vld [vmem:[#allocation2 + $0x28] sm:$0xe] }
  0x61   : > { %2947 = vmatmul.mubr.msk.bf16.gmra.mrb[4].mxu0 %vm805_vm9, %v2682_v35  ;;  %v2626_v63 = vrot.slane %v1007_v52, 9  ;;  %v2708_v3 = vcombine.low %v1632_v24, %v1636_v38  ;;  %v1034_v13 = vsel %vm3634_vm12, %v2623_v53, %v1033_v10  ;;  %v2709_v5 = vcombine.low %v1640_v6, %v1644_v48  ;;  %v1936_v52 = vld [vmem:[#allocation2 + $0x28] sm:$0xf]  ;;  %v3170_v53 = vld [vmem:[%s3944_s3 + $0xd8] sm:$0xff]  }
  0x62   : > { %2958 = vmatprep.mubr.msk.bf16.mxu0 %vm805_vm9, %v2707_v25  ;;  %v2614_v7 = vcombine.low %v3594_v17, %v3602_v37  ;;  %v1648_v8 = vsel %vm3634_vm12, %v2697_v54, %v1647_v55  ;;  %v2627_v11 = vrot.slane %v1008_v0, 9  ;;  %v1049_v10 = vrot.slane %v3541_v4, 5  ;;  %v1930_v17 = vld [vmem:[#allocation2 + $0x10] sm:$0xf]  ;;  %v3175_v48 = vld [vmem:[%s3944_s3 + $0x68] sm:$0xff]  }
  0x63   : > { %2895 = vmatmul.mubr.msk.bf16.vlgmr.msra.gmra.mrb[0].mxu1 %vm805_vm9, %v2612_v41  ;;  %v1652_v57 = vsel %vm3634_vm12, %v2698_v43, %v1651_v58  ;;  %v2628_v21 = vrot.slane %v1009_v20, 9  ;;  %v1053_v15 = vrot.slane %v3572_v49, 5  ;;  %v3167_v37 = vld [vmem:[%s3944_s3 + $0xd0] sm:$0xff]   ;;  %v1042_v4 = vsel %vm3634_vm12, %v2625_v60, %v1041_v32  ;;  %v1011_v49 = vld [vmem:[#allocation2 + $0x38] sm:$0xe] }
  0x64   : > { %2903 = vmatpush3.bf16.msra.mxu1 %v3564_v44  ;;  %2898 = vmatprep.mubr.msk.bf16.mxu1 %vm805_vm9, %v2613_v46  ;;  %v1038_v44 = vsel %vm3634_vm12, %v2624_v51, %v1037_v9  ;;  %v1046_v22 = vsel %vm3634_vm12, %v2626_v63, %v1045_v16  ;;  %v1947_v50 = vshrl.u32 %v1930_v17, 16  ;;  %v1950_v27 = vshll.u32 %v1930_v17, 16  ;;  %v3724_v32 = vld [vmem:[#allocation2 + $0x1c] sm:$0x1]  ;;  %v3754_v63 = vld [vmem:[#allocation2 + $0x24] sm:$0x1] }
  0x65   : > { %2904 = vmatprep.subr.bf16.mxu1 %v3163_v42  ;;  %v2639_v9 = vcombine.low %v1034_v13, %v1038_v44  ;;  %v1961_v28 = vshrl.u32 %v1932_v23, 16  ;;  %v1964_v34 = vshll.u32 %v1932_v23, 16  ;;  %v2710_v29 = vcombine.low %v1648_v8, %v1652_v57  ;;  %v3174_v0 = vld [vmem:[#allocation2 + $0x20] ss:$8 sps:$4 sm:$0xff]   ;;  %v3764_v44 = vld [vmem:[#allocation2 + $0x2c] sm:$0x1] }
  0x66   : > { %v1949_v16 = vrot.slane %v1947_v50, 4  ;;  %v1952_v2 = vrot.slane %v1950_v27, 5  ;;  %v2640_v31 = vcombine.low %v1042_v4, %v1046_v22  ;;  %v1050_v25 = vsel %vm3634_vm12, %v2627_v11, %v1049_v10  ;;  %v3178_v8 = vld [vmem:[#allocation2 + $0x30] ss:$8 sps:$4 sm:$0xff]  }
  0x67   : > { %v1963_v33 = vrot.slane %v1961_v28, 4  ;;  %v1966_v12 = vrot.slane %v1964_v34, 5  ;;  %v1054_v61 = vsel %vm3634_vm12, %v2628_v21, %v1053_v15  ;;  %v2629_v35 = vrot.slane %v1010_v56, 9  ;;  %v1940_v10 = vld [vmem:[#allocation2 + $0x38] sm:$0xf] }
  0x68   : > { %2905 = vmatpush3.bf16.msra.mxu1 %v3163_v42  ;;  %v1057_v41 = vrot.slane %v3596_v30, 5  ;;  %v1934_v42 = vld [vmem:[#allocation2 + $0x20] sm:$0xf]  ;;  %v2630_v47 = vrot.slane %v1011_v49, 9  ;;  %v1061_v36 = vrot.slane %v3604_v45, 5  ;;  %v1956_v59 = vshll.u32 %v3718_v14, 16 }
  0x69   : > { %2959 = vmatmul.mubr.msk.bf16.vlgmr.msra.gmra.mrb[0].mxu0 %vm805_vm9, %v2708_v3  ;;  %2906 = vmatprep.subr.bf16.mxu1 %v3166_v40  ;;  %v1970_v46 = vshll.u32 %v3724_v32, 16  ;;  %v1953_v51 = vor.u32 %v1952_v2, %v1949_v16  ;;  %v1967_v24 = vor.u32 %v1966_v12, %v1963_v33  ;;  %v1975_v38 = vshrl.u32 %v1934_v42, 16  ;;  %v3173_v45 = vld [vmem:[%s3944_s3 + $0xe0] sm:$0xff]   ;;  %v3177_v3 = vld [vmem:[%s3944_s3 + $0x70] sm:$0xff]   ;;  %v3176_v49 = vld [vmem:[%s3944_s3 + $0xe8] sm:$0xff]  }
  0x6a   : > { %2967 = vmatpush3.bf16.msra.mxu0 %v3591_v18  ;;  %2962 = vmatprep.mubr.msk.bf16.mxu0 %vm805_vm9, %v2709_v5  ;;  %v3172_v18 = vld [vmem:[#allocation2 + $0x10] ss:$8 sps:$4 sm:$0xff]   ;;  %v1978_v6 = vshll.u32 %v1934_v42, 16  ;;  %v2641_v30 = vcombine.low %v1050_v25, %v1054_v61  ;;  %v1989_v54 = vshrl.u32 %v1936_v52, 16  ;;  %v1058_v55 = vsel %vm3634_vm12, %v2629_v35, %v1057_v41  ;;  %v3767_v21 = vld [vmem:[#allocation2 + $0x34] sm:$0x1] }
  0x6b   : > { %2968 = vmatprep.subr.bf16.mxu0 %v3164_v19  ;;  %2899 = vmatmul.mubr.msk.bf16.gmra.mrb[4].mxu1 %vm805_vm9, %v2614_v7  ;;  %v1062_v43 = vsel %vm3634_vm12, %v2630_v47, %v1061_v36  ;;  %v3750_v58 = vrot.slane %v1956_v59, 5  ;;  %v3752_v60 = vrot.slane %v1970_v46, 5  ;;  %v3762_v13 = vrot.slane %v1967_v24, 4  ;;  %v1938_v7 = vld [vmem:[#allocation2 + $0x30] sm:$0xf]  ;;  %v3798_v59 = vld [vmem:[%s3944_s3 + $0x100] sm:$0xff]  }
  0x6c   : > { %2907 = vmatpush3.bf16.msra.mxu1 %v3166_v40  ;;  %2910 = vmatprep.mubr.msk.bf16.mxu1 %vm805_vm9, %v2639_v9  ;;  %v1992_v40 = vshll.u32 %v1936_v52, 16  ;;  %v1977_v20 = vrot.slane %v1975_v38, 4  ;;  %v1980_v5 = vrot.slane %v1978_v6, 5  ;;  %v2003_v57 = vshrl.u32 %v1938_v7, 16  ;;  %v3183_v34 = vld [vmem:[#allocation2 + $0x8] ss:$8 sps:$4 sm:$0xff]  }
  0x6d   : > { %2908 = vmatprep.subr.bf16.mxu1 %v3169_v26  ;;  %v2006_v9 = vshll.u32 %v1938_v7, 16  ;;  %v2017_v15 = vshrl.u32 %v1940_v10, 16  ;;  %v2020_v56 = vshll.u32 %v1940_v10, 16  ;;  %v2642_v17 = vcombine.low %v1058_v55, %v1062_v43  ;;  %v1942_v12 = vld [vmem:[#allocation2 + $0x40] sm:$0xf]  ;;  %v3179_v61 = vld [vmem:[%s3944_s3 + $0xf0] sm:$0xff]  }
  0x6e   : > { %2969 = vmatpush3.bf16.msra.mxu0 %v3164_v19  ;;  %v3760_v19 = vrot.slane %v1953_v51, 4  ;;  %v1994_v11 = vrot.slane %v1992_v40, 5  ;;  %v2005_v4 = vrot.slane %v2003_v57, 4  ;;  %v1981_v23 = vor.u32 %v1980_v5, %v1977_v20  ;;  %v1944_v25 = vld [vmem:[#allocation2 + $0x48] sm:$0xf] }
  0x6f   : > { %2970 = vmatprep.subr.bf16.mxu0 %v3167_v37  ;;  %v2008_v22 = vrot.slane %v2006_v9, 5  ;;  %v1984_v50 = vshll.u32 %v3754_v63, 16  ;;  %v2019_v27 = vrot.slane %v2017_v15, 4  ;;  %v2022_v28 = vrot.slane %v2020_v56, 5  ;;  %v3180_v36 = vld [vmem:[#allocation2 + $0x40] ss:$8 sps:$4 sm:$0xff]  }
  0x70   : > { %2909 = vmatpush3.bf16.msra.mxu1 %v3169_v26  ;;  %v1991_v26 = vrot.slane %v1989_v54, 4  ;;  %v1998_v16 = vshll.u32 %v3764_v44, 16  ;;  %v1959_v35 = vsel %vm3462_vm8, %v3760_v19, %v3750_v58  ;;  %v1973_v41 = vsel %vm3462_vm8, %v3762_v13, %v3752_v60  ;;  %v3803_v55 = vld [vmem:[#allocation2 + $0x4c] sm:$0x1]  ;;  %v3182_v19 = vld [vmem:[%s3944_s3 + $0xf8] sm:$0xff]  }
  0x71   : > { %2963 = vmatmul.mubr.msk.bf16.gmra.mrb[4].mxu0 %vm805_vm9, %v2710_v29  ;;  %2918 = vmatprep.subr.bf16.mxu1 %v3171_v39  ;;  %v2009_v2 = vor.u32 %v2008_v22, %v2005_v4  ;;  %v2012_v29 = vshll.u32 %v3767_v21, 16  ;;  %v2031_v42 = vshrl.u32 %v1942_v12, 16  ;;  %v2034_v47 = vshll.u32 %v1942_v12, 16  ;;  %v3185_v13 = vld [vmem:[#allocation2 + $0x18] ss:$8 sps:$4 sm:$0xff]   ;;  %v3186_v57 = vld [vmem:[%s3944_s3 + $0x108] sm:$0xff]  }
  0x72   : > { %2971 = vmatpush3.bf16.msra.mxu0 %v3167_v37  ;;  %2974 = vmatprep.mubr.msk.bf16.mxu0 %vm805_vm9, %v3172_v18  ;;  %v3769_v37 = vld [vmem:[#allocation2 + $0x3c] sm:$0x1]  ;;  %v1982_v46 = vrot.slane %v1981_v23, 4  ;;  %v1986_v52 = vrot.slane %v1984_v50, 5  ;;  %v2048_v51 = vshll.u32 %v1944_v25, 16  ;;  %v2000_v38 = vrot.slane %v1998_v16, 5 }
  0x73   : > { %2972 = vmatprep.subr.bf16.mxu0 %v3170_v53  ;;  %2911 = vmatmul.mubr.msk.bf16.vlgmr.msra.gmra.mrb[0].mxu1 %vm805_vm9, %v2640_v31  ;;  %v3181_v18 = vld [vmem:[%s3944_s3 + $0x78] sm:$0xff]   ;;  %v2023_v31 = vor.u32 %v2022_v28, %v2019_v27  ;;  %v2026_v33 = vshll.u32 %v3769_v37, 16  ;;  %v2010_v6 = vrot.slane %v2009_v2, 4  ;;  %v2747_v54 = vcombine.low %v1959_v35, %v1973_v41  ;;  %v2188_v23 = vld [vmem:[#allocation2 + $0x10] sm:$0xe] }
  0x74   : > { %2919 = vmatpush3.bf16.msra.mxu1 %v3171_v39  ;;  %2914 = vmatprep.mubr.msk.bf16.mxu1 %vm805_vm9, %v2641_v30  ;;  %v1995_v39 = vor.u32 %v1994_v11, %v1991_v26  ;;  %v2014_v30 = vrot.slane %v2012_v29, 5  ;;  %v2033_v43 = vrot.slane %v2031_v42, 4  ;;  %v2036_v58 = vrot.slane %v2034_v47, 5  ;;  %v2193_v5 = vld [vmem:[#allocation2 + $0x38] sm:$0xe] }
  0x75   : > { %2920 = vmatprep.subr.bf16.mxu1 %v3175_v48  ;;  %v2024_v40 = vrot.slane %v2023_v31, 4  ;;  %v1987_v20 = vsel %vm3462_vm8, %v1982_v46, %v1986_v52  ;;  %v2054_v10 = vshll.u32 %v3803_v55, 16  ;;  %v2230_v15 = vrot.slane %v3767_v21, 5  ;;  %v2189_v50 = vld [vmem:[#allocation2 + $0x18] sm:$0xe] }
  0x76   : > { %2973 = vmatpush3.bf16.msra.mxu0 %v3170_v53  ;;  %v2045_v53 = vshrl.u32 %v1944_v25, 16  ;;  %v1996_v24 = vrot.slane %v1995_v39, 4  ;;  %v2015_v26 = vsel %vm3462_vm8, %v2010_v6, %v2014_v30  ;;  %v2764_v56 = vrot.slane %v2193_v5, 9  ;;  %v3188_v39 = vld [vmem:[%s3944_s3 + $0x110] sm:$0xff]   ;;  %v2195_v31 = vld [vmem:[#allocation2 + $0x48] sm:$0xe] }
  0x77   : > { %2982 = vmatprep.subr.bf16.mxu0 %v3173_v45  ;;  %v2037_v22 = vor.u32 %v2036_v58, %v2033_v43  ;;  %v2214_v28 = vrot.slane %v3718_v14, 5  ;;  %v2759_v16 = vrot.slane %v2188_v23, 9  ;;  %v2760_v25 = vrot.slane %v2189_v50, 9  ;;  %v3190_v46 = vld [vmem:[%s3944_s3 + $0x118] sm:$0xff]  }
  0x78   : > { %2921 = vmatpush3.bf16.msra.mxu1 %v3175_v48  ;;  %v3801_v48 = vld [vmem:[#allocation2 + $0x44] sm:$0x1]  ;;  %v2047_v60 = vrot.slane %v2045_v53, 4  ;;  %v2001_v7 = vsel %vm3462_vm8, %v1996_v24, %v2000_v38  ;;  %v2218_v14 = vrot.slane %v3724_v32, 5  ;;  %v2242_v41 = vrot.slane %v3803_v55, 5 }
  0x79   : > { %2975 = vmatmul.mubr.msk.bf16.vlgmr.msra.gmra.mrb[0].mxu0 %vm805_vm9, %v3174_v0  ;;  %2922 = vmatprep.subr.bf16.mxu1 %v3177_v3  ;;  %v2050_v0 = vrot.slane %v2048_v51, 5  ;;  %v2040_v11 = vshll.u32 %v3801_v48, 16  ;;  %v2748_v27 = vcombine.low %v1987_v20, %v2001_v7  ;;  %v2238_v35 = vrot.slane %v3801_v48, 5  ;;  %v2190_v24 = vld [vmem:[#allocation2 + $0x20] sm:$0xe] }
  0x7a   : > { %2983 = vmatpush3.bf16.msra.mxu0 %v3173_v45  ;;  %2978 = vmatprep.mubr.msk.bf16.mxu0 %vm805_vm9, %v3178_v8  ;;  %v2028_v45 = vrot.slane %v2026_v33, 5  ;;  %v3187_v8 = vld [vmem:[#allocation2 + $0x28] ss:$8 sps:$4 sm:$0xff]   ;;  %v2038_v33 = vrot.slane %v2037_v22, 4  ;;  %v2215_v32 = vsel %vm3634_vm12, %v2759_v16, %v2214_v28  ;;  %v2219_v51 = vsel %vm3634_vm12, %v2760_v25, %v2218_v14 }
  0x7b   : > { %2984 = vmatprep.subr.bf16.mxu0 %v3176_v49  ;;  %2915 = vmatmul.mubr.msk.bf16.gmra.mrb[4].mxu1 %vm805_vm9, %v2642_v17  ;;  %v2234_v17 = vrot.slane %v3769_v37, 5  ;;  %v2042_v21 = vrot.slane %v2040_v11, 5  ;;  %v2056_v37 = vrot.slane %v2054_v10, 5  ;;  %v2191_v38 = vld [vmem:[#allocation2 + $0x28] sm:$0xe]  ;;  %v2775_v62 = vcombine.low %v2215_v32, %v2219_v51 }
  0x7c   : > { %2923 = vmatpush3.bf16.msra.mxu1 %v3177_v3  ;;  %2926 = vmatprep.mubr.msk.bf16.mxu1 %vm805_vm9, %v3183_v34  ;;  %v2192_v3 = vld [vmem:[#allocation2 + $0x30] sm:$0xe]  ;;  %v2029_v4 = vsel %vm3462_vm8, %v2024_v40, %v2028_v45  ;;  %v2222_v40 = vrot.slane %v3754_v63, 5  ;;  %v2762_v45 = vrot.slane %v2191_v38, 9  ;;  %v2226_v48 = vrot.slane %v3764_v44, 5 }
  0x7d   : > { %2924 = vmatprep.subr.bf16.mxu1 %v3181_v18  ;;  %v2763_v9 = vrot.slane %v2192_v3, 9  ;;  %v2749_v34 = vcombine.low %v2015_v26, %v2029_v4  ;;  %v2235_v29 = vsel %vm3634_vm12, %v2764_v56, %v2234_v17  ;;  %v2043_v52 = vsel %vm3462_vm8, %v2038_v33, %v2042_v21  ;;  %v2787_v10 = vld [vmem:[%s3945_s4] ss:$0 sm:$0xff] }
  0x7e   : > { %2985 = vmatpush3.bf16.msra.mxu0 %v3176_v49  ;;  %v2051_v49 = vor.u32 %v2050_v0, %v2047_v60  ;;  %v2227_v58 = vsel %vm3634_vm12, %v2762_v45, %v2226_v48 }
  0x7f   : > { %2986 = vmatprep.subr.bf16.mxu0 %v3179_v61  ;;  %v2231_v2 = vsel %vm3634_vm12, %v2763_v9, %v2230_v15 }
  0x80   : > { %2925 = vmatpush3.bf16.msra.mxu1 %v3181_v18  ;;  %v2194_v18 = vld [vmem:[#allocation2 + $0x40] sm:$0xe]  ;;  %v2052_v12 = vrot.slane %v2051_v49, 4  ;;  %v2777_v42 = vcombine.low %v2231_v2, %v2235_v29 }
  0x81   : > { %2979 = vmatmul.mubr.msk.bf16.gmra.mrb[4].mxu0 %vm805_vm9, %v3180_v36  ;;  %3014 = vmatprep.subr.bf16.mxu1 %v3798_v59  ;;  %v2765_v47 = vrot.slane %v2194_v18, 9  ;;  %v2766_v36 = vrot.slane %v2195_v31, 9 }
  0x82   : > { %2987 = vmatpush3.bf16.msra.mxu0 %v3179_v61  ;;  %2990 = vmatprep.mubr.msk.bf16.mxu0 %vm805_vm9, %v2747_v54  ;;  %v3189_v61 = vld [vmem:[#allocation2 + $0x38] ss:$8 sps:$4 sm:$0xff]   ;;  %v2057_v53 = vsel %vm3462_vm8, %v2052_v12, %v2056_v37  ;;  %v2761_v54 = vrot.slane %v2190_v24, 9 }
  0x83   : > { %2988 = vmatprep.subr.bf16.mxu0 %v3182_v19  ;;  %2927 = vmatmul.mubr.msk.bf16.vlgmr.msra.gmra.mrb[0].mxu1 %vm805_vm9, %v3185_v13  ;;  %v2243_v6 = vsel %vm3634_vm12, %v2766_v36, %v2242_v41  ;;  %v2750_v30 = vcombine.low %v2043_v52, %v2057_v53 }
  0x84   : > { %3018 = vmatpush3.bf16.msra.mxu1 %v3798_v59  ;;  %2930 = vmatprep.mubr.msk.bf16.mxu1 %vm805_vm9, %v3187_v8  ;;  %v2223_v43 = vsel %vm3634_vm12, %v2761_v54, %v2222_v40 }
  0x85   : > { %3015 = vmatprep.subr.bf16.mxu1 %v3186_v57  ;;  %v2776_v63 = vcombine.low %v2223_v43, %v2227_v58 }
  0x86   : > { %2989 = vmatpush3.bf16.msra.mxu0 %v3182_v19 }
  0x87   : > { %2998 = vmatprep.subr.bf16.mxu0 %v3798_v59 }
  0x88   : > { %3019 = vmatpush3.bf16.msra.mxu1 %v3186_v57 }
  0x89   : > { %2991 = vmatmul.mubr.msk.bf16.vlgmr.msra.gmra.mrb[0].mxu0 %vm805_vm9, %v2748_v27  ;;  %3016 = vmatprep.subr.bf16.mxu1 %v3188_v39 }
  0x8a   : > { %2999 = vmatpush3.bf16.msra.mxu0 %v3798_v59  ;;  %2994 = vmatprep.mubr.msk.bf16.mxu0 %vm805_vm9, %v2749_v34  ;;  %v2239_v59 = vsel %vm3634_vm12, %v2765_v47, %v2238_v35 }
  0x8b   : > { %3000 = vmatprep.subr.bf16.mxu0 %v3186_v57  ;;  %2931 = vmatmul.mubr.msk.bf16.gmra.mrb[4].mxu1 %vm805_vm9, %v3189_v61  ;;  %v2778_v55 = vcombine.low %v2239_v59, %v2243_v6 }
  0x8c   : > { %3020 = vmatpush3.bf16.msra.mxu1 %v3188_v39  ;;  %3010 = vmatprep.mubr.msk.bf16.mxu1 %vm805_vm9, %v2777_v42 }
  0x8d   : > { %3017 = vmatprep.subr.bf16.mxu1 %v3190_v46 }
  0x8e   : > { %3001 = vmatpush3.bf16.msra.mxu0 %v3186_v57 }
  0x8f   : > { %3002 = vmatprep.subr.bf16.mxu0 %v3188_v39 }
  0x90   : > { %3021 = vmatpush3.bf16.msra.mxu1 %v3190_v46 }
  0x91   : > { %2995 = vmatmul.mubr.msk.bf16.gmra.mrb[4].mxu0 %vm805_vm9, %v2750_v30 }
  0x92   : > { %3003 = vmatpush3.bf16.msra.mxu0 %v3188_v39  ;;  %3006 = vmatprep.mubr.msk.bf16.mxu0 %vm805_vm9, %v2775_v62 }
  0x93   : > { %3004 = vmatprep.subr.bf16.mxu0 %v3190_v46  ;;  %3011 = vmatmul.mubr.msk.bf16.vlgmr.msra.gmra.mrb[8].mxu1 %vm805_vm9, %v2778_v55 }
  0x96   : > { %3005 = vmatpush3.bf16.msra.mxu0 %v3190_v46 }
  0x99   : > { %3007 = vmatmul.mubr.msk.bf16.vlgmr.msra.gmra.mrb[0].mxu0 %vm805_vm9, %v2776_v63 }
 0x156   : > { %v2928_v44 = vpop.f32.mrb[0].mxu1 }
 0x157   : > { %v1300_v60 = vpop.f32.mrb[1].mxu1 }
 0x158   : > { %v2929_v0 = vpop.f32.mrb[2].mxu1 }
 0x159   : > { %v1303_v3 = vpop.f32.mrb[3].mxu1 }
 0x15e   : > { %v2932_v19 = vpop.f32.mrb[4].mxu1 }
 0x15f   : > { %v1316_v13 = vpop.f32.mrb[5].mxu1 }
 0x160   : > { %v2933_v20 = vpop.f32.mrb[6].mxu1 }
 0x161   : > { %v1319_v5 = vpop.f32.mrb[7].mxu1 }
 0x164   : > { %v2996_v7 = vpop.f32.mrb[4].mxu0 }
 0x165   : > { %v3026_v1 = vadd.f32 %v2996_v7, %v2932_v19  ;;  %v2165_v8 = vpop.f32.mrb[5].mxu0 }
 0x166   : > { %v3028_v26 = vadd.f32 %v2165_v8, %v1316_v13  ;;  %v2997_v11 = vpop.f32.mrb[6].mxu0  ;;  %v3012_v57 = vpop.f32.mrb[8].mxu1 }
 0x167   : > { %v3030_v9 = vadd.f32 %v2997_v11, %v2933_v20  ;;  %v2168_v15 = vpop.f32.mrb[7].mxu0  ;;  %v3027_v56 = vadd.f32 %v3026_v1, %v3012_v57  ;;  %v2351_v17 = vpop.f32.mrb[9].mxu1 }
 0x168   : > { %v3032_v4 = vadd.f32 %v2168_v15, %v1319_v5  ;;  %v3029_v22 = vadd.f32 %v3028_v26, %v2351_v17  ;;  %v3013_v49 = vpop.f32.mrb[10].mxu1 }
 0x169   : > { %v2387_v23 = vadd.f32 %v3027_v56, %v2787_v10  ;;  %v3031_v50 = vadd.f32 %v3030_v9, %v3013_v49  ;;  %v2354_v27 = vpop.f32.mrb[11].mxu1 }
 0x16a   : > { %v2385_v21 = vadd.f32 %v3029_v22, %v2787_v10  ;;  %v3033_v37 = vadd.f32 %v3032_v4, %v2354_v27 }
 0x16b   : > { %v2395_v28 = vmax.f32 %v2387_v23, 0.0  ;;  %v2388_v34 = vadd.f32 %v3031_v50, %v2787_v10 }
 0x16c   : > { %v3008_v39 = vpop.f32.mrb[0].mxu0  ;;  %v2393_v16 = vmax.f32 %v2385_v21, 0.0  ;;  %v2386_v2 = vadd.f32 %v3033_v37, %v2787_v10 }
 0x16d   : > { %v3022_v29 = vadd.f32 %v3008_v39, %v2928_v44  ;;  %v2403_v18 = vpack.c.bf16 %v2395_v28, %v2395_v28  ;;  %v2335_v31 = vpop.f32.mrb[1].mxu0  ;;  %v2396_v33 = vmax.f32 %v2388_v34, 0.0 }
 0x16e   : > { %v3023_v12 = vadd.f32 %v2335_v31, %v1300_v60  ;;  %v2401_v25 = vpack.c.bf16 %v2393_v16, %v2393_v16  ;;  %v3009_v14 = vpop.f32.mrb[2].mxu0  ;;  %v2394_v61 = vmax.f32 %v2386_v2, 0.0 }
 0x16f   : > { %v2383_v35 = vadd.f32 %v3022_v29, %v2787_v10  ;;  %2412 = vst.msk [vmem:[%s361_s22 + $0x18] sm:$0xf] %vm2405_vm13, %v2403_v18  ;;  %v3024_v41 = vadd.f32 %v3009_v14, %v2929_v0  ;;  %v2404_v42 = vpack.c.bf16 %v2396_v33, %v2396_v33  ;;  %v2338_v47 = vpop.f32.mrb[3].mxu0 }
 0x170   : > { %v2381_v36 = vadd.f32 %v3023_v12, %v2787_v10  ;;  %2410 = vst.msk [vmem:[%s361_s22 + $0x10] sm:$0xf] %vm2405_vm13, %v2401_v25  ;;  %v3025_v46 = vadd.f32 %v2338_v47, %v1303_v3  ;;  %v2402_v32 = vpack.c.bf16 %v2394_v61, %v2394_v61 }
 0x171   : > { %v2391_v52 = vmax.f32 %v2383_v35, 0.0  ;;  %v2384_v53 = vadd.f32 %v3024_v41, %v2787_v10  ;;  %2413 = vst.msk [vmem:[%s361_s22 + $0x1c] sm:$0xf] %vm2405_vm13, %v2404_v42 }
 0x172   : > { %v2389_v51 = vmax.f32 %v2381_v36, 0.0  ;;  %v2382_v24 = vadd.f32 %v3025_v46, %v2787_v10  ;;  %2411 = vst.msk [vmem:[%s361_s22 + $0x14] sm:$0xf] %vm2405_vm13, %v2402_v32 }
 0x173   : > { %v2399_v38 = vpack.c.bf16 %v2391_v52, %v2391_v52  ;;  %v2392_v59 = vmax.f32 %v2384_v53, 0.0 }
 0x174   : > { %v2397_v6 = vpack.c.bf16 %v2389_v51, %v2389_v51  ;;  %v2390_v30 = vmax.f32 %v2382_v24, 0.0 }
 0x175   : > { %2408 = vst.msk [vmem:[%s361_s22 + $0x8] sm:$0xf] %vm2405_vm13, %v2399_v38  ;;  %v2400_v62 = vpack.c.bf16 %v2392_v59, %v2392_v59 }
 0x176   : > { %2406 = vst.msk [vmem:[%s361_s22] sm:$0xf] %vm2405_vm13, %v2397_v6  ;;  %v2398_v54 = vpack.c.bf16 %v2390_v30, %v2390_v30 }
 0x177   : > { %2409 = vst.msk [vmem:[%s361_s22 + $0xc] sm:$0xf] %vm2405_vm13, %v2400_v62 }
 0x178   : > { %2407 = vst.msk [vmem:[%s361_s22 + $0x4] sm:$0xf] %vm2405_vm13, %v2398_v54 }
 0x179   : > { %3204 = shalt.err (!%p3201_p5)
}
 0x17a   : > { %s3205_s11 = scalar_lea.hbm %s3886_s6, 512  ;;  %s3209_s14 = scalar_lea.hbm %s3946_s5, 1024 }
 0x17b   : > { %p3206_p6 = scmp.ne.s32.totalorder %s3886_s6, %s3205_s11  ;;  %p3210_p10 = scmp.lt.u32.totalorder %s3886_s6, %s3946_s5 }
 0x17c   : > { %p3211_p11 = scmp.lt.u32.totalorder %s3209_s14, %s3205_s11  ;;  %p3213_p13 = scmp.lt.u32.totalorder %s3205_s11, %s3886_s6 }
 0x17d   : > { %p3207_p7 = pnand %p3206_p6, %p3345_p4 }
 0x17e   : > { %p3212_p12 = por %p3211_p11, %p3210_p10 }
 0x17f   : > { %p3208_p9 = pneg %p3207_p7 }
 0x180   : > { %p3214_p0 = por %p3213_p13, %p3212_p12 }
 0x182   : > { %p3215_p1 = pnand %p3214_p0, %p3208_p9 }
 0x184   : > { %3218 = shalt.err (!%p3215_p1)
}
 0x185   : > { %s3273_s17 = smov 64   ;;  %s3274_s22 = smov 4  }
 0x186   : > { %3086 = dma.vmem_to_hbm [thread:$0]  (%p3345_p4), %s3888_s25, 512, %s3886_s6, %s3895_s1, %s3273_s17, %s3273_s17, %s3274_s22  }
 0x187 PF: > { %p3092_p2 = scmp.ge.s32.totalorder %s3269_s21, 2  ;;  %s2446_s23 = sand.u32 1, %s3249_s18  }
 0x188   : > { %s2447_s27 = scalar_lea.sflag [#allocation4], %s2446_s23 }
 0x189   : > { %p3089_p3 = pnand %p3092_p2, %p3352_p8 }
 0x18b   : > { %3244 = dma.done.wait (!%p3089_p3), %s2447_s27, 512  }
 0x18c   : > { %3246 = vsyncadd (!%p3089_p3), %s2447_s27, 4294966784  ;;  %s18_s21 = sadd.s32 1, %s3269_s21   ;;  %s3957_s18 = smov %s3253_s19 }
 0x18d   : > { %p15_p5 = scmp.ge.s32.totalorder %s18_s21, 4   ;;  %s3958_s19 = smov %s3257_s20 }
 0x18e   : > { %s3959_s20 = smov %s3358_s29  ;;  %s3960_s1 = smov %s3265_s2 }
 0x18f   : > { %s3961_s2 = smov %s3963_s24  ;;  %17 = sbr.rel (!%p15_p5) target bundleno = 4 (0x4), region = 106 }
 0x196   :  { %2452 = vsyncpa [#allocation4], 1 }
 0x197   :  { %2454 = vsyncpa [#allocation4 + $0x1], 1 }

</bundles_post_ra>
